<compile_context>
chip_gen: v7x
topology: tpu7x:2x2x1
jax: 0.10.0
libtpu: 0.0.40
codegen_flags: <defaults>
</compile_context>

<pallas_src>
import functools

import jax
import jax.numpy as jnp
from jax import lax
from jax.experimental import pallas as pl
from jax.experimental.pallas import tpu as pltpu


def _round_up(x, m):
    return ((x + m - 1) // m) * m


def ffblock_last_kernel(x_ref, gamma_ref, beta_ref, w1_ref, b1_ref,
                        wcat_ref, bcat_ref, o_ref, hx_ref, *, eps, d_model):
    """Grid = (row_tiles, vocab_tiles); vocab is the inner ("arbitrary") axis.

    hx_ref: persistent VMEM scratch holding [relu(LN(x)@W1+b1) | x] for the
    current row tile; recomputed only when the vocab index is 0.
    """
    j = pl.program_id(1)
    f_dim = w1_ref.shape[1]   # (padded) d_ff  -> hx split point (lane aligned)
    d_pad = x_ref.shape[1]    # (padded) d_model

    @pl.when(j == 0)
    def _():
        x = x_ref[...].astype(jnp.float32)
        # --- LayerNorm over the real d_model lanes (padding lanes are 0) ----
        mean = jnp.sum(x, axis=-1, keepdims=True) * (1.0 / d_model)
        diff = x - mean
        if d_pad != d_model:  # static: exclude padding lanes from the variance
            lane = lax.broadcasted_iota(jnp.int32, x.shape, 1)
            diff = jnp.where(lane < d_model, diff, 0.0)
        var = jnp.sum(diff * diff, axis=-1, keepdims=True) * (1.0 / d_model)
        xn = diff * lax.rsqrt(var + eps)
        xn = xn * gamma_ref[...].astype(jnp.float32) \
             + beta_ref[...].astype(jnp.float32)
        # --- first FF matmul + ReLU (dropout = identity in eval mode) -------
        # MXU operands in the weight dtype (bf16 when prepped), f32 accumulate.
        h = jnp.dot(xn.astype(w1_ref.dtype), w1_ref[...],
                    preferred_element_type=jnp.float32)
        h = jnp.maximum(h + b1_ref[...].astype(jnp.float32), 0.0)
        # Stash [h | x] via two sliced stores (no concatenated vreg temp).
        hx_ref[:, :f_dim] = h.astype(hx_ref.dtype)
        hx_ref[:, f_dim:] = x.astype(hx_ref.dtype)

    # --- fused:  [h | x] @ [[W2]; [Wp]]  +  (b2 + bp)  for this vocab tile ---
    out = jnp.dot(hx_ref[...], wcat_ref[...], preferred_element_type=jnp.float32)
    out = out + bcat_ref[...].astype(jnp.float32)
    o_ref[...] = out.astype(o_ref.dtype)


def prepare_params(params, *, compute_dtype=None, lane=128):
    """One-time weight prep (hoisted out of the per-call path).

    * Pads d_model / d_ff / n_vocab to multiples of `lane` (128).
    * Fuses W2 and the residual projection Wp into one (F+D, V) matrix and
      b2 + bp into one bias (added in f32).
    * Optionally casts the streamed matmul weights to `compute_dtype`
      (e.g. jnp.bfloat16) so the MXU runs bf16 inputs with f32 accumulation.
    """
    D, F = params["w1"].shape
    V = params["w2"].shape[1]
    D_pad = _round_up(D, lane)
    F_pad = _round_up(F, lane)
    V_pad = _round_up(V, lane)
    wdt = compute_dtype if compute_dtype is not None else params["w1"].dtype

    def pad2(a, r, c):
        return jnp.pad(a, ((0, r - a.shape[0]), (0, c - a.shape[1])))

    w1 = pad2(params["w1"], D_pad, F_pad).astype(wdt)
    b1 = pad2(params["b1"], 1, F_pad).astype(jnp.float32)
    wcat = jnp.concatenate(
        [pad2(params["w2"], F_pad, V_pad), pad2(params["wp"], D_pad, V_pad)],
        axis=0).astype(wdt)                                       # (F+D, V)
    bcat = pad2(params["b2"].astype(jnp.float32)
                + params["bp"].astype(jnp.float32), 1, V_pad)     # (1, V)
    return {
        "d_model": D, "d_ff": F, "n_vocab": V,
        "gamma": pad2(params["gamma"], 1, D_pad).astype(jnp.float32),
        "beta": pad2(params["beta"], 1, D_pad).astype(jnp.float32),
        "w1": w1, "b1": b1, "wcat": wcat, "bcat": bcat,
    }


def feed_forward_block_last(x, prepped, *, eps=1e-5, tm=512, tv=512,
                            vmem_limit_bytes=None):
    """x: (B, S, D) -> (B, S, V).  `prepped` comes from prepare_params().

    Tuning: v6e/v5e tm=512 (or larger), tv=512; v7x prefer tm=256-384, tv=256.
    """
    B, S, D = x.shape
    assert D == prepped["d_model"]
    V = prepped["n_vocab"]
    D_pad = prepped["gamma"].shape[1]
    F_pad = prepped["w1"].shape[1]
    FD_pad = prepped["wcat"].shape[0]
    V_pad = prepped["wcat"].shape[1]
    M = B * S

    # Row tile: multiple of 8 sublanes, clipped to the problem size.
    tm = max(8, _round_up(min(tm, M), 8))
    M_pad = _round_up(M, tm)
    # Give the "parallel" row axis >= 2 tiles when possible (v7x: 2 TCs/chip).
    if M_pad // tm < 2 and M_pad >= 16:
        tm = max(8, _round_up(M_pad // 2, 8))
        M_pad = _round_up(M, tm)
    # Vocab tile: multiple of 128 lanes that divides the padded vocab.
    tv = max(128, min(_round_up(tv, 128), V_pad))
    while V_pad % tv:
        tv -= 128

    if vmem_limit_bytes is None:
        try:
            cap = pltpu.get_tpu_info().vmem_capacity_bytes
        except Exception:
            cap = 128 * 1024 * 1024
        vmem_limit_bytes = min(100 * 1024 * 1024, int(cap * 0.85))

    x2d = x.reshape(M, D)
    if (M_pad, D_pad) != (M, D):
        x2d = jnp.pad(x2d, ((0, M_pad - M), (0, D_pad - D)))

    hx_dtype = prepped["wcat"].dtype
    grid = (M_pad // tm, V_pad // tv)
    const = lambda i, j: (0, 0)   # un-tiled operands (DMA'd once)

    def build(single_buffer_const):
        # Single-buffer the grid-invariant operands (index_map is constant, so
        # double buffering only wastes VMEM — a full extra W1 copy).
        kw = dict(pipeline_mode=pl.Buffered(1)) if single_buffer_const else {}
        in_specs = [
            pl.BlockSpec((tm, D_pad), lambda i, j: (i, 0)),   # x rows (reused over j)
            pl.BlockSpec((1, D_pad), const, **kw),            # gamma
            pl.BlockSpec((1, D_pad), const, **kw),            # beta
            pl.BlockSpec((D_pad, F_pad), const, **kw),        # W1
            pl.BlockSpec((1, F_pad), const, **kw),            # b1
            pl.BlockSpec((FD_pad, tv), lambda i, j: (0, j)),  # [W2; Wp] vocab tile
            pl.BlockSpec((1, tv), lambda i, j: (0, j)),       # (b2 + bp) vocab tile
        ]
        return pl.pallas_call(
            functools.partial(ffblock_last_kernel, eps=eps, d_model=D),
            out_shape=jax.ShapeDtypeStruct((M_pad, V_pad), x.dtype),
            grid_spec=pltpu.PrefetchScalarGridSpec(
                num_scalar_prefetch=0,
                grid=grid,
                in_specs=in_specs,
                out_specs=pl.BlockSpec((tm, tv), lambda i, j: (i, j)),
                scratch_shapes=[pltpu.VMEM((tm, FD_pad), hx_dtype)],
            ),
            compiler_params=pltpu.CompilerParams(
                dimension_semantics=("parallel", "arbitrary"),
                vmem_limit_bytes=vmem_limit_bytes,
            ),
        )

    args = (x2d, prepped["gamma"], prepped["beta"], prepped["w1"],
            prepped["b1"], prepped["wcat"], prepped["bcat"])
    try:
        out2d = build(True)(*args)
    except Exception:
        # Fallback for jax versions without BlockSpec(pipeline_mode=...).
        out2d = build(False)(*args)

    return out2d[:M, :V].reshape(B, S, V)


def init_params(key, d_model, d_ff, n_vocab, dtype=jnp.float32):
    ks = jax.random.split(key, 6)
    scale1 = 1.0 / jnp.sqrt(d_model)
    scale2 = 1.0 / jnp.sqrt(d_ff)
    return {
        # LayerNorm
        "gamma": jnp.ones((1, d_model), dtype),
        "beta": jnp.zeros((1, d_model), dtype),
        # w_1: d_model -> d_ff   (stored as (in, out), i.e. torch weight.T)
        "w1": jax.random.uniform(ks[0], (d_model, d_ff), dtype, -1, 1) * scale1,
        "b1": jax.random.uniform(ks[1], (1, d_ff), dtype, -1, 1) * scale1,
        # w_2: d_ff -> n_vocab
        "w2": jax.random.uniform(ks[2], (d_ff, n_vocab), dtype, -1, 1) * scale2,
        "b2": jax.random.uniform(ks[3], (1, n_vocab), dtype, -1, 1) * scale2,
        # proj_fc: d_model -> n_vocab
        "wp": jax.random.uniform(ks[4], (d_model, n_vocab), dtype, -1, 1) * scale1,
        "bp": jax.random.uniform(ks[5], (1, n_vocab), dtype, -1, 1) * scale1,
    }


def reference(x, p, eps=1e-5):
    xf = x.astype(jnp.float32)
    mean = jnp.mean(xf, -1, keepdims=True)
    var = jnp.mean(jnp.square(xf - mean), -1, keepdims=True)
    xn = (xf - mean) / jnp.sqrt(var + eps) * p["gamma"][0] + p["beta"][0]
    h = jnp.maximum(xn @ p["w1"] + p["b1"][0], 0.0)
    ff = h @ p["w2"] + p["b2"][0]
    proj = xf @ p["wp"] + p["bp"][0]
    return (ff + proj).astype(x.dtype)


if __name__ == "__main__":
    key = jax.random.PRNGKey(0)

    # ---- test 1: f32 weights, small config (d_model=32, d_ff=64, n_vocab=128)
    B, S, D, F, V = 2, 8, 32, 64, 128
    kx, kp, key = jax.random.split(key, 3)
    x = jax.random.normal(kx, (B, S, D), jnp.float32)
    params = init_params(kp, D, F, V)
    prepped = prepare_params(params)

    out = jax.block_until_ready(feed_forward_block_last(x, prepped))
    ref = reference(x, params)
    assert out.shape == (B, S, V), out.shape
    assert jnp.allclose(out, ref, atol=1e-4, rtol=1e-4), float(
        jnp.max(jnp.abs(out - ref)))

    # ---- test 2: non-divisible shapes -> exercises row/vocab/D/F padding,
    #              the multi-tile vocab loop and the pl.when()-guarded scratch
    B2, S2, D2, F2, V2 = 2, 9, 32, 64, 300
    kx2, kp2, key = jax.random.split(key, 3)
    x2 = jax.random.normal(kx2, (B2, S2, D2), jnp.float32)
    params2 = init_params(kp2, D2, F2, V2)
    prepped2 = prepare_params(params2)

    out2 = jax.block_until_ready(
        feed_forward_block_last(x2, prepped2, tm=8, tv=128))
    ref2 = reference(x2, params2)
    assert out2.shape == (B2, S2, V2), out2.shape
    assert jnp.allclose(out2, ref2, atol=1e-4, rtol=1e-4), float(
        jnp.max(jnp.abs(out2 - ref2)))

    # ---- test 3: bf16 MXU operands (f32 accumulation), looser tolerance -----
    prepped_bf16 = prepare_params(params, compute_dtype=jnp.bfloat16)
    out3 = jax.block_until_ready(feed_forward_block_last(x, prepped_bf16))
    assert out3.shape == (B, S, V), out3.shape
    assert jnp.allclose(out3.astype(jnp.float32), ref, atol=0.15, rtol=0.1), float(
        jnp.max(jnp.abs(out3.astype(jnp.float32) - ref)))

    print("KERNEL_OK")
</pallas_src>

<mosaic_0001>
module attributes {stable_mosaic.version = 11 : i64} {
  func.func @ffblock_last_kernel(%arg0: i32, %arg1: i32, %arg2: memref<8x128xf32, #tpu.memory_space<vmem>>, %arg3: memref<1x128xf32, #tpu.memory_space<vmem>>, %arg4: memref<1x128xf32, #tpu.memory_space<vmem>>, %arg5: memref<128x128xf32, #tpu.memory_space<vmem>>, %arg6: memref<1x128xf32, #tpu.memory_space<vmem>>, %arg7: memref<256x128xf32, #tpu.memory_space<vmem>>, %arg8: memref<1x128xf32, #tpu.memory_space<vmem>>, %arg9: memref<8x128xf32, #tpu.memory_space<vmem>>, %arg10: memref<8x256xf32, #tpu.memory_space<vmem>>) attributes {dimension_semantics = [#tpu.dimension_semantics<parallel>, #tpu.dimension_semantics<arbitrary>], iteration_bounds = array<i64: 2, 1>, scalar_prefetch = 0 : i64, scratch_operands = 1 : i64, tpu.core_type = #tpu.core_type<tc>, window_params = [{transform_indices = @transform_0, window_bounds = array<i64: 8, 128>}, {pipeline_mode = #tpu.pipeline_mode<synchronous>, transform_indices = @transform_1, window_bounds = array<i64: 1, 128>}, {pipeline_mode = #tpu.pipeline_mode<synchronous>, transform_indices = @transform_2, window_bounds = array<i64: 1, 128>}, {pipeline_mode = #tpu.pipeline_mode<synchronous>, transform_indices = @transform_3, window_bounds = array<i64: 128, 128>}, {pipeline_mode = #tpu.pipeline_mode<synchronous>, transform_indices = @transform_4, window_bounds = array<i64: 1, 128>}, {transform_indices = @transform_5, window_bounds = array<i64: 256, 128>}, {transform_indices = @transform_6, window_bounds = array<i64: 1, 128>}, {transform_indices = @transform_7, window_bounds = array<i64: 8, 128>}]} {
    %c0_i32 = arith.constant 0 : i32
    %0 = arith.cmpi eq, %arg1, %c0_i32 : i32
    %1 = arith.extui %0 : i1 to i32
    %c0_i32_0 = arith.constant 0 : i32
    %2 = arith.cmpi ne, %1, %c0_i32_0 : i32
    scf.if %2 {
      %c0_8 = arith.constant 0 : index
      %c0_9 = arith.constant 0 : index
      %10 = vector.load %arg2[%c0_8, %c0_9] : memref<8x128xf32, #tpu.memory_space<vmem>>, vector<8x128xf32>
      %cst_10 = arith.constant dense<0.000000e+00> : vector<8xf32>
      %11 = vector.multi_reduction <add>, %10, %cst_10 [1] : vector<8x128xf32> to vector<8xf32>
      %12 = vector.shape_cast %11 : vector<8xf32> to vector<8x1xf32>
      %cst_11 = arith.constant 3.125000e-02 : f32
      %13 = vector.broadcast %cst_11 : f32 to vector<8x1xf32>
      %14 = arith.mulf %12, %13 : vector<8x1xf32>
      %15 = vector.broadcast %14 : vector<8x1xf32> to vector<8x128xf32>
      %16 = arith.subf %10, %15 : vector<8x128xf32>
      %17 = tpu.iota {dimensions = array<i32: 1>} : vector<8x128xi32>
      %c32_i32 = arith.constant 32 : i32
      %18 = vector.broadcast %c32_i32 : i32 to vector<8x128xi32>
      %19 = arith.cmpi slt, %17, %18 : vector<8x128xi32>
      %cst_12 = arith.constant 0.000000e+00 : f32
      %20 = vector.broadcast %cst_12 : f32 to vector<8x128xf32>
      %21 = arith.select %19, %16, %20 : vector<8x128xi1>, vector<8x128xf32>
      %22 = arith.mulf %21, %21 : vector<8x128xf32>
      %cst_13 = arith.constant dense<0.000000e+00> : vector<8xf32>
      %23 = vector.multi_reduction <add>, %22, %cst_13 [1] : vector<8x128xf32> to vector<8xf32>
      %24 = vector.shape_cast %23 : vector<8xf32> to vector<8x1xf32>
      %cst_14 = arith.constant 3.125000e-02 : f32
      %25 = vector.broadcast %cst_14 : f32 to vector<8x1xf32>
      %26 = arith.mulf %24, %25 : vector<8x1xf32>
      %cst_15 = arith.constant 9.99999974E-6 : f32
      %27 = vector.broadcast %cst_15 : f32 to vector<8x1xf32>
      %28 = arith.addf %26, %27 : vector<8x1xf32>
      %29 = math.rsqrt %28 : vector<8x1xf32>
      %30 = vector.broadcast %29 : vector<8x1xf32> to vector<8x128xf32>
      %31 = arith.mulf %21, %30 : vector<8x128xf32>
      %c0_16 = arith.constant 0 : index
      %c0_17 = arith.constant 0 : index
      %32 = vector.load %arg3[%c0_16, %c0_17] : memref<1x128xf32, #tpu.memory_space<vmem>>, vector<1x128xf32>
      %33 = vector.broadcast %32 : vector<1x128xf32> to vector<8x128xf32>
      %34 = arith.mulf %31, %33 : vector<8x128xf32>
      %c0_18 = arith.constant 0 : index
      %c0_19 = arith.constant 0 : index
      %35 = vector.load %arg4[%c0_18, %c0_19] : memref<1x128xf32, #tpu.memory_space<vmem>>, vector<1x128xf32>
      %36 = vector.broadcast %35 : vector<1x128xf32> to vector<8x128xf32>
      %37 = arith.addf %34, %36 : vector<8x128xf32>
      %c0_20 = arith.constant 0 : index
      %c0_21 = arith.constant 0 : index
      %38 = vector.load %arg5[%c0_20, %c0_21] : memref<128x128xf32, #tpu.memory_space<vmem>>, vector<128x128xf32>
      %cst_22 = arith.constant dense<0.000000e+00> : vector<8x128xf32>
      %39 = tpu.matmul %37, %38, %cst_22 {dimension_numbers = #tpu.dot_dimension_numbers<[1], [0], [0], [1], [0, 0, 1, 1], [], []>} : vector<8x128xf32>, vector<128x128xf32>, vector<8x128xf32> -> vector<8x128xf32>
      %c0_23 = arith.constant 0 : index
      %c0_24 = arith.constant 0 : index
      %40 = vector.load %arg6[%c0_23, %c0_24] : memref<1x128xf32, #tpu.memory_space<vmem>>, vector<1x128xf32>
      %41 = vector.broadcast %40 : vector<1x128xf32> to vector<8x128xf32>
      %42 = arith.addf %39, %41 : vector<8x128xf32>
      %cst_25 = arith.constant 0.000000e+00 : f32
      %43 = vector.broadcast %cst_25 : f32 to vector<8x128xf32>
      %44 = arith.maximumf %42, %43 : vector<8x128xf32>
      %c0_26 = arith.constant 0 : index
      %c0_27 = arith.constant 0 : index
      %45 = vector.load %arg10[%c0_26, %c0_27] : memref<8x256xf32, #tpu.memory_space<vmem>>, vector<8x128xf32>
      tpu.vector_store %arg10[%c0_26, %c0_27], %44 {strides = array<i32>} : memref<8x256xf32, #tpu.memory_space<vmem>>, vector<8x128xf32>,
      %c0_28 = arith.constant 0 : index
      %c128 = arith.constant 128 : index
      %46 = vector.load %arg10[%c0_28, %c128] : memref<8x256xf32, #tpu.memory_space<vmem>>, vector<8x128xf32>
      tpu.vector_store %arg10[%c0_28, %c128], %10 {strides = array<i32>} : memref<8x256xf32, #tpu.memory_space<vmem>>, vector<8x128xf32>,
    } else {
    }
    %c0 = arith.constant 0 : index
    %c0_1 = arith.constant 0 : index
    %3 = vector.load %arg10[%c0, %c0_1] : memref<8x256xf32, #tpu.memory_space<vmem>>, vector<8x256xf32>
    %c0_2 = arith.constant 0 : index
    %c0_3 = arith.constant 0 : index
    %4 = vector.load %arg7[%c0_2, %c0_3] : memref<256x128xf32, #tpu.memory_space<vmem>>, vector<256x128xf32>
    %cst = arith.constant dense<0.000000e+00> : vector<8x128xf32>
    %5 = tpu.matmul %3, %4, %cst {dimension_numbers = #tpu.dot_dimension_numbers<[1], [0], [0], [1], [0, 0, 1, 1], [], []>} : vector<8x256xf32>, vector<256x128xf32>, vector<8x128xf32> -> vector<8x128xf32>
    %c0_4 = arith.constant 0 : index
    %c0_5 = arith.constant 0 : index
    %6 = vector.load %arg8[%c0_4, %c0_5] : memref<1x128xf32, #tpu.memory_space<vmem>>, vector<1x128xf32>
    %7 = vector.broadcast %6 : vector<1x128xf32> to vector<8x128xf32>
    %8 = arith.addf %5, %7 : vector<8x128xf32>
    %c0_6 = arith.constant 0 : index
    %c0_7 = arith.constant 0 : index
    %9 = vector.load %arg9[%c0_6, %c0_7] : memref<8x128xf32, #tpu.memory_space<vmem>>, vector<8x128xf32>
    tpu.vector_store %arg9[%c0_6, %c0_7], %8 {strides = array<i32>} : memref<8x128xf32, #tpu.memory_space<vmem>>, vector<8x128xf32>,
    return
  }
  func.func @transform_0(%arg0: i32, %arg1: i32) -> (i32, i32) {
    %c0_i32 = arith.constant 0 : i32
    %c0_i32_0 = arith.constant 0 : i32
    return %arg0, %c0_i32 : i32, i32
  }
  func.func @transform_1(%arg0: i32, %arg1: i32) -> (i32, i32) {
    %c0_i32 = arith.constant 0 : i32
    %c0_i32_0 = arith.constant 0 : i32
    %c0_i32_1 = arith.constant 0 : i32
    return %c0_i32, %c0_i32_0 : i32, i32
  }
  func.func @transform_2(%arg0: i32, %arg1: i32) -> (i32, i32) {
    %c0_i32 = arith.constant 0 : i32
    %c0_i32_0 = arith.constant 0 : i32
    %c0_i32_1 = arith.constant 0 : i32
    return %c0_i32, %c0_i32_0 : i32, i32
  }
  func.func @transform_3(%arg0: i32, %arg1: i32) -> (i32, i32) {
    %c0_i32 = arith.constant 0 : i32
    %c0_i32_0 = arith.constant 0 : i32
    %c0_i32_1 = arith.constant 0 : i32
    return %c0_i32, %c0_i32_0 : i32, i32
  }
  func.func @transform_4(%arg0: i32, %arg1: i32) -> (i32, i32) {
    %c0_i32 = arith.constant 0 : i32
    %c0_i32_0 = arith.constant 0 : i32
    %c0_i32_1 = arith.constant 0 : i32
    return %c0_i32, %c0_i32_0 : i32, i32
  }
  func.func @transform_5(%arg0: i32, %arg1: i32) -> (i32, i32) {
    %c0_i32 = arith.constant 0 : i32
    %c0_i32_0 = arith.constant 0 : i32
    return %c0_i32, %arg1 : i32, i32
  }
  func.func @transform_6(%arg0: i32, %arg1: i32) -> (i32, i32) {
    %c0_i32 = arith.constant 0 : i32
    %c0_i32_0 = arith.constant 0 : i32
    return %c0_i32, %arg1 : i32, i32
  }
  func.func @transform_7(%arg0: i32, %arg1: i32) -> (i32, i32) {
    %c0_i32 = arith.constant 0 : i32
    return %arg0, %arg1 : i32, i32
  }
}

module attributes {stable_mosaic.version = 11 : i64} {
  func.func @ffblock_last_kernel(%arg0: i32, %arg1: i32, %arg2: memref<8x128xf32, #tpu.memory_space<vmem>>, %arg3: memref<1x128xf32, #tpu.memory_space<vmem>>, %arg4: memref<1x128xf32, #tpu.memory_space<vmem>>, %arg5: memref<128x128xf32, #tpu.memory_space<vmem>>, %arg6: memref<1x128xf32, #tpu.memory_space<vmem>>, %arg7: memref<256x128xf32, #tpu.memory_space<vmem>>, %arg8: memref<1x128xf32, #tpu.memory_space<vmem>>, %arg9: memref<8x128xf32, #tpu.memory_space<vmem>>, %arg10: memref<8x256xf32, #tpu.memory_space<vmem>>) attributes {dimension_semantics = [#tpu.dimension_semantics<parallel>, #tpu.dimension_semantics<arbitrary>], iteration_bounds = array<i64: 2, 1>, scalar_prefetch = 0 : i64, scratch_operands = 1 : i64, tpu.core_type = #tpu.core_type<tc>, window_params = [{transform_indices = @transform_0, window_bounds = array<i64: 8, 128>}, {pipeline_mode = #tpu.pipeline_mode<synchronous>, transform_indices = @transform_1, window_bounds = array<i64: 1, 128>}, {pipeline_mode = #tpu.pipeline_mode<synchronous>, transform_indices = @transform_2, window_bounds = array<i64: 1, 128>}, {pipeline_mode = #tpu.pipeline_mode<synchronous>, transform_indices = @transform_3, window_bounds = array<i64: 128, 128>}, {pipeline_mode = #tpu.pipeline_mode<synchronous>, transform_indices = @transform_4, window_bounds = array<i64: 1, 128>}, {transform_indices = @transform_5, window_bounds = array<i64: 256, 128>}, {transform_indices = @transform_6, window_bounds = array<i64: 1, 128>}, {transform_indices = @transform_7, window_bounds = array<i64: 8, 128>}]} {
    %c0_i32 = arith.constant 0 : i32
    %0 = arith.cmpi eq, %arg1, %c0_i32 : i32
    %1 = arith.extui %0 : i1 to i32
    %c0_i32_0 = arith.constant 0 : i32
    %2 = arith.cmpi ne, %1, %c0_i32_0 : i32
    scf.if %2 {
      %c0_8 = arith.constant 0 : index
      %c0_9 = arith.constant 0 : index
      %10 = vector.load %arg2[%c0_8, %c0_9] : memref<8x128xf32, #tpu.memory_space<vmem>>, vector<8x128xf32>
      %cst_10 = arith.constant dense<0.000000e+00> : vector<8xf32>
      %11 = vector.multi_reduction <add>, %10, %cst_10 [1] : vector<8x128xf32> to vector<8xf32>
      %12 = vector.shape_cast %11 : vector<8xf32> to vector<8x1xf32>
      %cst_11 = arith.constant 3.125000e-02 : f32
      %13 = vector.broadcast %cst_11 : f32 to vector<8x1xf32>
      %14 = arith.mulf %12, %13 : vector<8x1xf32>
      %15 = vector.broadcast %14 : vector<8x1xf32> to vector<8x128xf32>
      %16 = arith.subf %10, %15 : vector<8x128xf32>
      %17 = tpu.iota {dimensions = array<i32: 1>} : vector<8x128xi32>
      %c32_i32 = arith.constant 32 : i32
      %18 = vector.broadcast %c32_i32 : i32 to vector<8x128xi32>
      %19 = arith.cmpi slt, %17, %18 : vector<8x128xi32>
      %cst_12 = arith.constant 0.000000e+00 : f32
      %20 = vector.broadcast %cst_12 : f32 to vector<8x128xf32>
      %21 = arith.select %19, %16, %20 : vector<8x128xi1>, vector<8x128xf32>
      %22 = arith.mulf %21, %21 : vector<8x128xf32>
      %cst_13 = arith.constant dense<0.000000e+00> : vector<8xf32>
      %23 = vector.multi_reduction <add>, %22, %cst_13 [1] : vector<8x128xf32> to vector<8xf32>
      %24 = vector.shape_cast %23 : vector<8xf32> to vector<8x1xf32>
      %cst_14 = arith.constant 3.125000e-02 : f32
      %25 = vector.broadcast %cst_14 : f32 to vector<8x1xf32>
      %26 = arith.mulf %24, %25 : vector<8x1xf32>
      %cst_15 = arith.constant 9.99999974E-6 : f32
      %27 = vector.broadcast %cst_15 : f32 to vector<8x1xf32>
      %28 = arith.addf %26, %27 : vector<8x1xf32>
      %29 = math.rsqrt %28 : vector<8x1xf32>
      %30 = vector.broadcast %29 : vector<8x1xf32> to vector<8x128xf32>
      %31 = arith.mulf %21, %30 : vector<8x128xf32>
      %c0_16 = arith.constant 0 : index
      %c0_17 = arith.constant 0 : index
      %32 = vector.load %arg3[%c0_16, %c0_17] : memref<1x128xf32, #tpu.memory_space<vmem>>, vector<1x128xf32>
      %33 = vector.broadcast %32 : vector<1x128xf32> to vector<8x128xf32>
      %34 = arith.mulf %31, %33 : vector<8x128xf32>
      %c0_18 = arith.constant 0 : index
      %c0_19 = arith.constant 0 : index
      %35 = vector.load %arg4[%c0_18, %c0_19] : memref<1x128xf32, #tpu.memory_space<vmem>>, vector<1x128xf32>
      %36 = vector.broadcast %35 : vector<1x128xf32> to vector<8x128xf32>
      %37 = arith.addf %34, %36 : vector<8x128xf32>
      %c0_20 = arith.constant 0 : index
      %c0_21 = arith.constant 0 : index
      %38 = vector.load %arg5[%c0_20, %c0_21] : memref<128x128xf32, #tpu.memory_space<vmem>>, vector<128x128xf32>
      %cst_22 = arith.constant dense<0.000000e+00> : vector<8x128xf32>
      %39 = tpu.matmul %37, %38, %cst_22 {dimension_numbers = #tpu.dot_dimension_numbers<[1], [0], [0], [1], [0, 0, 1, 1], [], []>} : vector<8x128xf32>, vector<128x128xf32>, vector<8x128xf32> -> vector<8x128xf32>
      %c0_23 = arith.constant 0 : index
      %c0_24 = arith.constant 0 : index
      %40 = vector.load %arg6[%c0_23, %c0_24] : memref<1x128xf32, #tpu.memory_space<vmem>>, vector<1x128xf32>
      %41 = vector.broadcast %40 : vector<1x128xf32> to vector<8x128xf32>
      %42 = arith.addf %39, %41 : vector<8x128xf32>
      %cst_25 = arith.constant 0.000000e+00 : f32
      %43 = vector.broadcast %cst_25 : f32 to vector<8x128xf32>
      %44 = arith.maximumf %42, %43 : vector<8x128xf32>
      %c0_26 = arith.constant 0 : index
      %c0_27 = arith.constant 0 : index
      %45 = vector.load %arg10[%c0_26, %c0_27] : memref<8x256xf32, #tpu.memory_space<vmem>>, vector<8x128xf32>
      tpu.vector_store %arg10[%c0_26, %c0_27], %44 {strides = array<i32>} : memref<8x256xf32, #tpu.memory_space<vmem>>, vector<8x128xf32>,
      %c0_28 = arith.constant 0 : index
      %c128 = arith.constant 128 : index
      %46 = vector.load %arg10[%c0_28, %c128] : memref<8x256xf32, #tpu.memory_space<vmem>>, vector<8x128xf32>
      tpu.vector_store %arg10[%c0_28, %c128], %10 {strides = array<i32>} : memref<8x256xf32, #tpu.memory_space<vmem>>, vector<8x128xf32>,
    } else {
    }
    %c0 = arith.constant 0 : index
    %c0_1 = arith.constant 0 : index
    %3 = vector.load %arg10[%c0, %c0_1] : memref<8x256xf32, #tpu.memory_space<vmem>>, vector<8x256xf32>
    %c0_2 = arith.constant 0 : index
    %c0_3 = arith.constant 0 : index
    %4 = vector.load %arg7[%c0_2, %c0_3] : memref<256x128xf32, #tpu.memory_space<vmem>>, vector<256x128xf32>
    %cst = arith.constant dense<0.000000e+00> : vector<8x128xf32>
    %5 = tpu.matmul %3, %4, %cst {dimension_numbers = #tpu.dot_dimension_numbers<[1], [0], [0], [1], [0, 0, 1, 1], [], []>} : vector<8x256xf32>, vector<256x128xf32>, vector<8x128xf32> -> vector<8x128xf32>
    %c0_4 = arith.constant 0 : index
    %c0_5 = arith.constant 0 : index
    %6 = vector.load %arg8[%c0_4, %c0_5] : memref<1x128xf32, #tpu.memory_space<vmem>>, vector<1x128xf32>
    %7 = vector.broadcast %6 : vector<1x128xf32> to vector<8x128xf32>
    %8 = arith.addf %5, %7 : vector<8x128xf32>
    %c0_6 = arith.constant 0 : index
    %c0_7 = arith.constant 0 : index
    %9 = vector.load %arg9[%c0_6, %c0_7] : memref<8x128xf32, #tpu.memory_space<vmem>>, vector<8x128xf32>
    tpu.vector_store %arg9[%c0_6, %c0_7], %8 {strides = array<i32>} : memref<8x128xf32, #tpu.memory_space<vmem>>, vector<8x128xf32>,
    return
  }
  func.func @transform_0(%arg0: i32, %arg1: i32) -> (i32, i32) {
    %c0_i32 = arith.constant 0 : i32
    %c0_i32_0 = arith.constant 0 : i32
    return %arg0, %c0_i32 : i32, i32
  }
  func.func @transform_1(%arg0: i32, %arg1: i32) -> (i32, i32) {
    %c0_i32 = arith.constant 0 : i32
    %c0_i32_0 = arith.constant 0 : i32
    %c0_i32_1 = arith.constant 0 : i32
    return %c0_i32, %c0_i32_0 : i32, i32
  }
  func.func @transform_2(%arg0: i32, %arg1: i32) -> (i32, i32) {
    %c0_i32 = arith.constant 0 : i32
    %c0_i32_0 = arith.constant 0 : i32
    %c0_i32_1 = arith.constant 0 : i32
    return %c0_i32, %c0_i32_0 : i32, i32
  }
  func.func @transform_3(%arg0: i32, %arg1: i32) -> (i32, i32) {
    %c0_i32 = arith.constant 0 : i32
    %c0_i32_0 = arith.constant 0 : i32
    %c0_i32_1 = arith.constant 0 : i32
    return %c0_i32, %c0_i32_0 : i32, i32
  }
  func.func @transform_4(%arg0: i32, %arg1: i32) -> (i32, i32) {
    %c0_i32 = arith.constant 0 : i32
    %c0_i32_0 = arith.constant 0 : i32
    %c0_i32_1 = arith.constant 0 : i32
    return %c0_i32, %c0_i32_0 : i32, i32
  }
  func.func @transform_5(%arg0: i32, %arg1: i32) -> (i32, i32) {
    %c0_i32 = arith.constant 0 : i32
    %c0_i32_0 = arith.constant 0 : i32
    return %c0_i32, %arg1 : i32, i32
  }
  func.func @transform_6(%arg0: i32, %arg1: i32) -> (i32, i32) {
    %c0_i32 = arith.constant 0 : i32
    %c0_i32_0 = arith.constant 0 : i32
    return %c0_i32, %arg1 : i32, i32
  }
  func.func @transform_7(%arg0: i32, %arg1: i32) -> (i32, i32) {
    %c0_i32 = arith.constant 0 : i32
    return %arg0, %arg1 : i32, i32
  }
}

</mosaic_0001>

<bundles_post_ra>
// kernel: tpu_custom_call.1
= control target key start
LH: loop header
LB: loop body
LE: loop exit
PB: predicated region body
PF: predicated region fallthrough
CT: control target
= control target key end

     0   :  { %s1786_s0 = inlined_call_operand.hbm [shape: f32[16,128], index: 0, kind: input, shape index: {}]   ;;  %s1787_s1 = inlined_call_operand.hbm [shape: f32[1,128], index: 1, kind: input, shape index: {}]   ;;  %s1788_s2 = inlined_call_operand.hbm [shape: f32[1,128], index: 2, kind: input, shape index: {}]   ;;  %s1789_s3 = inlined_call_operand.hbm [shape: f32[128,128], index: 3, kind: input, shape index: {}]   ;;  %s1790_s4 = inlined_call_operand.hbm [shape: f32[1,128], index: 4, kind: input, shape index: {}]   ;;  %s1791_s5 = inlined_call_operand.hbm [shape: f32[256,128], index: 5, kind: input, shape index: {}]   ;;  %s1792_s6 = inlined_call_operand.hbm [shape: f32[1,128], index: 6, kind: input, shape index: {}]   ;;  %s1793_s7 = inlined_call_operand.hbm [shape: f32[16,128], index: 7, kind: output, shape index: {}]  }
   0x1   :  { %1799 = sst [smem:[#allocation21_spill]] %s1787_s1 }
   0x2   :  { %1800 = sst [smem:[#allocation22_spill]] %s1789_s3 }
   0x3   :  { %12 = vsyncpa [#allocation4], 0 }
   0x4   :  { %14 = vsyncpa [#allocation4 + $0x1], 0 }
   0x5   :  { %15 = vsyncpa [#allocation7], 0 }
   0x6   :  { %16 = vsyncpa [#allocation10], 0 }
   0x7   :  { %17 = vsyncpa [#allocation13], 0 }
   0x8   :  { %18 = vsyncpa [#allocation5], 0 }
   0x9   :  { %20 = vsyncpa [#allocation5 + $0x1], 0  ;;  %s1449_s24 = smov 0   ;;  %s1451_s25 = smov 0  }
   0xa   :  { %s1453_s26 = smov 0   ;;  %s1455_s27 = smov 0  }
   0xb   :  { %s1457_s28 = smov 0   ;;  %s1459_s29 = smov 0  }
   0xc LB: > { %s1797_s30 = sadd.s32 4294967295, %s1394_s29   ;;  %p802_p0 = scmp.ge.s32.totalorder %s1394_s29, 1  ;;  %s1394_s29 = sphi %s1459_s29, %s26_s29   ;;  %s1390_s28 = sphi %s1457_s28, %s1823_s28   ;;  %s1386_s27 = sphi %s1455_s27, %s1822_s27   ;;  %s1382_s26 = sphi %s1453_s26, %s1821_s26   ;;  %s1378_s25 = sphi %s1451_s25, %s1820_s25   ;;  %s1374_s24 = sphi %s1449_s24, %s1819_s24  }
   0xd   : > { %p1483_p1 = scmp.eq.s32.totalorder %s1797_s30, 0  ;;  %p233_p2 = scmp.lt.s32.totalorder %s1394_s29, 3 }
   0xe   : > { %s1396_s10 = smov [#allocation6]   ;;  %s1397_s12 = smov [#allocation9]  }
   0xf   : > { %s1801_s8 = scalar_select %p1483_p1, 1, 0 }
  0x10   : > { %p1488_p3 = pnand %p802_p0, %p233_p2  ;;  %s246_s11 = sshll.u32 %s1396_s10, 4  ;;  %s247_s11 = int_to_ptr.vmem [resolvable:$true] %s246_s11 }
  0x11   : > { %s267_s13 = sshll.u32 %s1397_s12, 4  ;;  %s1398_s15 = smov [#allocation12]   ;;  %s1501_s13 = int_to_ptr.vmem [resolvable:$true] %s267_s13 }
  0x12   : > { %s1802_s9 = scalar_select %p1488_p3, 1, 0 }
  0x13   : > { %p1000_p5 = pneg %p1488_p3  ;;  %s1503_s16 = sshll.u32 %s1398_s15, 4  ;;  %s294_s16 = int_to_ptr.vmem [resolvable:$true] %s1503_s16 }
  0x14   : > { %s1804_s1 = sld [smem:[#allocation21_spill]] }
  0x15   : > { %p1497_p6 = pnand %p1000_p5, %p1483_p1 }
  0x17   : > { %p1513_p8 = pneg %p1497_p6 }
  0x1a   : > { %s1102_s19 = scalar_lea.hbm %s1804_s1, 16 }
  0x1b   : > { %p1103_p7 = scmp.ne.s32.totalorder %s1804_s1, %s1102_s19  ;;  %p1109_p11 = scmp.lt.u32.totalorder %s1102_s19, %s1804_s1 }
  0x1d   : > { %p1105_p9 = pnand %p1513_p8, %p1103_p7 }
  0x1f   : > { %p1106_p10 = pneg %p1105_p9 }
  0x21   : > { %p1111_p12 = pnand %p1109_p11, %p1106_p10 }
  0x23   : > { %1114 = shalt.err (!%p1111_p12)
}
  0x24   : > { %s1115_s12 = scalar_lea.vmem %s247_s11, 16  ;;  %s1122_s15 = scalar_lea.vmem %s247_s11, 32 }
  0x25   : > { %p1116_p13 = scmp.ne.s32.totalorder %s247_s11, %s1115_s12  ;;  %p1123_p5 = scmp.lt.s32.totalorder %s247_s11, %s247_s11 }
  0x26   : > { %p1124_p4 = scmp.lt.s32.totalorder %s1122_s15, %s1115_s12 }
  0x27   : > { %p1118_p0 = pnand %p1116_p13, %p1513_p8 }
  0x28   : > { %p1125_p3 = por %p1124_p4, %p1123_p5 }
  0x29   : > { %p1119_p2 = pneg %p1118_p0 }
  0x2b   : > { %p1126_p1 = pnand %p1125_p3, %p1119_p2 }
  0x2d   : > { %1129 = shalt.err (!%p1126_p1)
}
  0x2e   : > { %1003 = dma.hbm_to_vmem [thread:$0]  (!%p1497_p6), %s1804_s1, 16, %s247_s11, [#allocation7]  }
  0x2f   : > { %s1806_s3 = sld [smem:[#allocation22_spill]] }
  0x35   : > { %s1130_s21 = scalar_lea.hbm %s1806_s3, 2048 }
  0x36   : > { %p1131_p7 = scmp.ne.s32.totalorder %s1806_s3, %s1130_s21  ;;  %p1137_p1 = scmp.lt.u32.totalorder %s1130_s21, %s1806_s3 }
  0x38   : > { %p1133_p9 = pnand %p1131_p7, %p1513_p8 }
  0x3a   : > { %p1134_p4 = pneg %p1133_p9 }
  0x3c   : > { %p1139_p3 = pnand %p1137_p1, %p1134_p4 }
  0x3e   : > { %1142 = shalt.err (!%p1139_p3)
}
  0x3f   : > { %s1143_s11 = scalar_lea.vmem %s1501_s13, 2048  ;;  %p1151_p13 = scmp.lt.s32.totalorder %s1501_s13, %s1501_s13 }
  0x40   : > { %p1144_p10 = scmp.ne.s32.totalorder %s1501_s13, %s1143_s11  ;;  %p1152_p0 = scmp.lt.s32.totalorder %s1143_s11, %s1143_s11 }
  0x42   : > { %p1146_p11 = pnand %p1144_p10, %p1513_p8  ;;  %p1153_p2 = por %p1152_p0, %p1151_p13 }
  0x44   : > { %p1147_p12 = pneg %p1146_p11 }
  0x46   : > { %p1154_p5 = pnand %p1153_p2, %p1147_p12 }
  0x48   : > { %1157 = shalt.err (!%p1154_p5)
}
  0x49   : > { %s1399_s17 = smov 128   ;;  %s1400_s18 = smov 8  }
  0x4a   : > { %1009 = dma.hbm_to_vmem [thread:$0]  (!%p1497_p6), %s1806_s3, 2048, %s1501_s13, [#allocation10], %s1399_s17, %s1399_s17, %s1400_s18  }
  0x4b   : > { %s1158_s10 = scalar_lea.hbm %s1791_s5, 4096 }
  0x4c   : > { %p1159_p7 = scmp.ne.s32.totalorder %s1791_s5, %s1158_s10  ;;  %p1165_p1 = scmp.lt.u32.totalorder %s1158_s10, %s1791_s5 }
  0x4e   : > { %p1161_p9 = pnand %p1159_p7, %p1513_p8 }
  0x50   : > { %p1162_p4 = pneg %p1161_p9 }
  0x52   : > { %p1167_p3 = pnand %p1165_p1, %p1162_p4 }
  0x54   : > { %1170 = shalt.err (!%p1167_p3)
}
  0x55   : > { %s1171_s19 = scalar_lea.vmem %s294_s16, 4096  ;;  %p1179_p13 = scmp.lt.s32.totalorder %s294_s16, %s294_s16 }
  0x56   : > { %p1172_p10 = scmp.ne.s32.totalorder %s294_s16, %s1171_s19  ;;  %p1180_p0 = scmp.lt.s32.totalorder %s1171_s19, %s1171_s19 }
  0x58   : > { %p1174_p11 = pnand %p1172_p10, %p1513_p8  ;;  %p1181_p2 = por %p1180_p0, %p1179_p13 }
  0x5a   : > { %p1175_p12 = pneg %p1174_p11 }
  0x5c   : > { %p1182_p5 = pnand %p1181_p2, %p1175_p12 }
  0x5e   : > { %1185 = shalt.err (!%p1182_p5)
}
  0x5f   : > { %1015 = dma.hbm_to_vmem [thread:$0]  (!%p1497_p6), %s1791_s5, 4096, %s294_s16, [#allocation13], %s1399_s17, %s1399_s17, %s1400_s18  }
  0x60   : > { %s1401_s30 = smov [#allocation8]   ;;  %s1402_s23 = smov [#allocation11]  }
  0x61   : > { %s257_s21 = sshll.u32 %s1401_s30, 4  ;;  %s281_s10 = sshll.u32 %s1402_s23, 4  ;;  %s258_s21 = int_to_ptr.vmem [resolvable:$true] %s257_s21  ;;  %s282_s10 = int_to_ptr.vmem [resolvable:$true] %s281_s10 }
  0x62   : > { %s1186_s11 = scalar_lea.hbm %s1788_s2, 16 }
  0x63   : > { %p1187_p7 = scmp.ne.s32.totalorder %s1788_s2, %s1186_s11  ;;  %p1193_p1 = scmp.lt.u32.totalorder %s1186_s11, %s1788_s2 }
  0x65   : > { %p1189_p9 = pnand %p1187_p7, %p1513_p8 }
  0x67   : > { %p1190_p4 = pneg %p1189_p9 }
  0x69   : > { %p1195_p3 = pnand %p1193_p1, %p1190_p4 }
  0x6b   : > { %1198 = shalt.err (!%p1195_p3)
}
  0x6c   : > { %s1199_s16 = scalar_lea.vmem %s258_s21, 16  ;;  %s1206_s17 = scalar_lea.vmem %s258_s21, 32 }
  0x6d   : > { %p1200_p10 = scmp.ne.s32.totalorder %s258_s21, %s1199_s16  ;;  %p1207_p13 = scmp.lt.s32.totalorder %s258_s21, %s258_s21 }
  0x6e   : > { %p1208_p0 = scmp.lt.s32.totalorder %s1206_s17, %s1199_s16 }
  0x6f   : > { %p1202_p11 = pnand %p1200_p10, %p1513_p8 }
  0x70   : > { %p1209_p2 = por %p1208_p0, %p1207_p13 }
  0x71   : > { %p1203_p12 = pneg %p1202_p11 }
  0x73   : > { %p1210_p5 = pnand %p1209_p2, %p1203_p12 }
  0x75   : > { %1213 = shalt.err (!%p1210_p5)
}
  0x76   : > { %1006 = dma.hbm_to_vmem [thread:$0]  (!%p1497_p6), %s1788_s2, 16, %s258_s21, [#allocation7]  }
  0x77   : > { %s1214_s30 = scalar_lea.hbm %s1790_s4, 16 }
  0x78   : > { %p1215_p7 = scmp.ne.s32.totalorder %s1790_s4, %s1214_s30  ;;  %p1221_p1 = scmp.lt.u32.totalorder %s1214_s30, %s1790_s4 }
  0x7a   : > { %p1217_p9 = pnand %p1215_p7, %p1513_p8 }
  0x7c   : > { %p1218_p4 = pneg %p1217_p9 }
  0x7e   : > { %p1223_p3 = pnand %p1221_p1, %p1218_p4 }
  0x80   : > { %1226 = shalt.err (!%p1223_p3)
}
  0x81   : > { %s1227_s19 = scalar_lea.vmem %s282_s10, 16  ;;  %s1234_s21 = scalar_lea.vmem %s282_s10, 32 }
  0x82   : > { %p1228_p10 = scmp.ne.s32.totalorder %s282_s10, %s1227_s19  ;;  %p1235_p13 = scmp.lt.s32.totalorder %s282_s10, %s282_s10 }
  0x83   : > { %p1236_p0 = scmp.lt.s32.totalorder %s1234_s21, %s1227_s19 }
  0x84   : > { %p1230_p11 = pnand %p1228_p10, %p1513_p8 }
  0x85   : > { %p1237_p2 = por %p1236_p0, %p1235_p13 }
  0x86   : > { %p1231_p12 = pneg %p1230_p11 }
  0x88   : > { %p1238_p5 = pnand %p1237_p2, %p1231_p12 }
  0x8a   : > { %1241 = shalt.err (!%p1238_p5)
}
  0x8b   : > { %1012 = dma.hbm_to_vmem [thread:$0]  (!%p1497_p6), %s1790_s4, 16, %s282_s10, [#allocation10]  }
  0x8c   : > { %s1403_s17 = smov [#allocation14]   ;;  %s1242_s20 = scalar_lea.hbm %s1792_s6, 16 }
  0x8d   : > { %s309_s1 = sshll.u32 %s1403_s17, 4  ;;  %p1243_p7 = scmp.ne.s32.totalorder %s1792_s6, %s1242_s20  ;;  %s310_s1 = int_to_ptr.vmem [resolvable:$true] %s309_s1 }
  0x8e   : > { %p1249_p1 = scmp.lt.u32.totalorder %s1242_s20, %s1792_s6 }
  0x8f   : > { %p1245_p9 = pnand %p1243_p7, %p1513_p8 }
  0x91   : > { %p1246_p4 = pneg %p1245_p9 }
  0x93   : > { %p1251_p3 = pnand %p1249_p1, %p1246_p4 }
  0x95   : > { %1254 = shalt.err (!%p1251_p3)
}
  0x96   : > { %s1255_s10 = scalar_lea.vmem %s310_s1, 16  ;;  %s1262_s11 = scalar_lea.vmem %s310_s1, 32 }
  0x97   : > { %p1256_p10 = scmp.ne.s32.totalorder %s310_s1, %s1255_s10  ;;  %p1263_p13 = scmp.lt.s32.totalorder %s310_s1, %s310_s1 }
  0x98   : > { %p1264_p0 = scmp.lt.s32.totalorder %s1262_s11, %s1255_s10 }
  0x99   : > { %p1258_p11 = pnand %p1256_p10, %p1513_p8 }
  0x9a   : > { %p1265_p2 = por %p1264_p0, %p1263_p13 }
  0x9b   : > { %p1259_p12 = pneg %p1258_p11 }
  0x9d   : > { %p1266_p5 = pnand %p1265_p2, %p1259_p12 }
  0x9f   : > { %1269 = shalt.err (!%p1266_p5)
}
  0xa0   : > { %1018 = dma.hbm_to_vmem [thread:$0]  (!%p1497_p6), %s1792_s6, 16, %s310_s1, [#allocation13]  }
  0xa1   : > { %s801_s22 = sadd.s32 4294967294, %s1394_s29   ;;  %s38_s13 = sadd.s32 1, %s1390_s28 }
  0xa2   : > { %p40_p8 = scmp.ge.s32.totalorder %s38_s13, 2  ;;  %s45_s14 = sadd.s32 1, %s1382_s26 }
  0xa3   : > { %p52_p7 = scmp.ne.s32.totalorder %s1382_s26, %s1378_s25  ;;  %p53_p9 = scmp.eq.s32.totalorder %s1394_s29, 0 }
  0xa4   : > { %s1825_s13 = smov (%p40_p8, %s38_s13), 0  ;;  %p58_p1 = scmp.ne.s32.totalorder %s1378_s25, %s1374_s24 }
  0xa5   : > { %p1633_p4 = por %p53_p9, %p52_p7  ;;  %s42_s17 = ssub.s32 %s1390_s28, %s1825_s13 }
  0xa6   : > { %s1808_s1 = sadd.s32 4294967295, %s1394_s29   ;;  %p43_p3 = scmp.eq.s32.totalorder %s42_s17, 0 }
  0xa7   : > { %p220_p6 = scmp.eq.s32.totalorder %s1808_s1, 1  ;;  %p1809_p10 = scmp.ne.s32.totalorder %s1801_s8, 0 }
  0xa8   : > { %p226_p13 = scmp.eq.s32.totalorder %s801_s22, 1  ;;  %p1033_p2 = scmp.lt.s32.totalorder %s1394_s29, 2 }
  0xa9   : > { %p1645_p11 = por %p1809_p10, %p58_p1  ;;  %p1649_p12 = por %p220_p6, %p52_p7 }
  0xaa   : > { %s1654_s20 = scalar_select %p43_p3, %s1382_s26, %s45_s14  }
  0xab   : > { %s1811_s3 = scalar_select %p1649_p12, 1, 0 }
  0xac   : > { %p1656_p0 = por %p226_p13, %p58_p1  ;;  %s320_s23 = sand.u32 1, %s1382_s26  }
  0xad   : > { %s811_s12 = sshll.u32 %s1390_s28, 7  ;;  %s810_s15 = sshll.u32 %s320_s23, 3 }
  0xae   : > { %s1812_s30 = scalar_select %p1656_p0, 1, 0 }
  0xaf   : > { %s1666_s19 = scalar_lea.hbm %s1786_s0, %s811_s12  ;;  %s324_s21 = scalar_lea.vmem [#allocation3], %s810_s15 }
  0xb0   : > { %s331_s22 = sshll.u32 %s324_s21, 4  ;;  %p1670_p5 = pnand %p1033_p2, %p1633_p4  ;;  %s1674_s22 = int_to_ptr.vmem [resolvable:$true] %s331_s22 }
  0xb1   : > { %s321_s17 = scalar_lea.sflag [#allocation4], %s320_s23  ;;  %s1270_s1 = scalar_lea.hbm %s1666_s19, 128 }
  0xb2   : > { %p1271_p8 = scmp.ne.s32.totalorder %s1666_s19, %s1270_s1  ;;  %p1272_p7 = pneg %p1670_p5 }
  0xb3   : > { %s1275_s16 = scalar_lea.hbm %s1786_s0, 256  ;;  %p1276_p4 = scmp.lt.u32.totalorder %s1666_s19, %s1786_s0 }
  0xb4   : > { %p1273_p9 = pnand %p1272_p7, %p1271_p8  ;;  %p1277_p6 = scmp.lt.u32.totalorder %s1275_s16, %s1270_s1 }
  0xb5   : > { %p1279_p10 = scmp.lt.u32.totalorder %s1270_s1, %s1666_s19 }
  0xb6   : > { %p1274_p1 = pneg %p1273_p9  ;;  %p1278_p3 = por %p1277_p6, %p1276_p4 }
  0xb8   : > { %p1280_p13 = por %p1279_p10, %p1278_p3 }
  0xba   : > { %p1281_p2 = pnand %p1280_p13, %p1274_p1 }
  0xbc   : > { %1284 = shalt.err (!%p1281_p2)
}
  0xbd   : > { %s1285_s23 = scalar_lea.vmem %s1674_s22, 128  ;;  %s1404_s21 = smov [#allocation3]  }
  0xbe   : > { %p1286_p8 = scmp.ne.s32.totalorder %s1674_s22, %s1285_s23  ;;  %s1290_s12 = sshll.u32 %s1404_s21, 4  ;;  %s1291_s12 = int_to_ptr.vmem [resolvable:$false] %s1290_s12 }
  0xbf   : > { %s1292_s15 = scalar_lea.vmem %s1291_s12, 256  ;;  %p1293_p12 = scmp.lt.s32.totalorder %s1674_s22, %s1291_s12 }
  0xc0   : > { %p1288_p9 = pnand %p1286_p8, %p1272_p7  ;;  %p1294_p4 = scmp.lt.s32.totalorder %s1292_s15, %s1285_s23 }
  0xc2   : > { %p1289_p0 = pneg %p1288_p9  ;;  %p1295_p6 = por %p1294_p4, %p1293_p12 }
  0xc4   : > { %p1296_p3 = pnand %p1295_p6, %p1289_p0 }
  0xc6   : > { %1299 = shalt.err (!%p1296_p3)
}
  0xc7   : > { %1022 = dma.hbm_to_vmem [thread:$0]  (!%p1670_p5), %s1666_s19, 128, %s1674_s22, %s321_s17  }
  0xc8   : > { %p1814_p1 = scmp.ne.s32.totalorder %s1802_s9, 0 }
  0xc9   : > { %s1704_s1 = sand.u32 (!%p1814_p1), 1, %s1378_s25  }
  0xca   : > { %340 = sbr.rel (%p1814_p1) target bundleno = 977 (0x3d1), region = 48  ;;  %s813_s16 = sshll.u32 (!%p1814_p1), %s1704_s1, 3 }
  0xcb   : > { %s343_s10 = scalar_lea.sflag (!%p1814_p1), [#allocation4], %s1704_s1  ;;  %s346_s11 = scalar_lea.vmem (!%p1814_p1), [#allocation3], %s813_s16 }
  0xd1   : > { %1353 = dma.done.wait (%p1645_p11), %s343_s10, 128  }
  0xd2   : > { %1355 = vsyncadd (%p1645_p11), %s343_s10, 4294967168  ;;  %p1815_p12 = scmp.ne.s32.totalorder %s1801_s8, 0 }
  0xd4   : > { %1357 = dma.done.wait (%p1815_p12), [#allocation7], 32  }
  0xd5   : > { %1359 = vsyncadd (%p1815_p12), [#allocation7], 4294967264 }
  0xd6   : > { %1361 = dma.done.wait (%p1815_p12), [#allocation10], 2064  }
  0xd7   : > { %1363 = vsyncadd (%p1815_p12), [#allocation10], 4294965232 }
  0xd8   : > { %1365 = dma.done.wait (%p1815_p12), [#allocation13], 4112  }
  0xd9   : > { %1367 = vsyncadd (%p1815_p12), [#allocation13], 4294963184  ;;  %v405_v0 = vld [vmem:[%s346_s11] sm:$0xff]  ;;  %v437_v1 = vld [vmem:[#allocation9] sm:$0xff]  ;;  %v1405_v4 = vmov 0.0|0.0   ;;  %v410_v11 = vlaneseq  ;;  %vm1406_vm1 = vmmov 0  }
  0xda   : > { %406 = vadd.xlane.f32.xlu0 %v405_v0  ;;  %638 = vmatprep.mubr.f32.mxu1 %v405_v0  ;;  %v438_v2 = vld [vmem:[#allocation9 + $0x8] sm:$0xff]  ;;  %v439_v3 = vld [vmem:[#allocation9 + $0x10] sm:$0xff]  ;;  %v440_v6 = vld [vmem:[#allocation9 + $0x18] sm:$0xff]  ;;  %v1407_v26 = vmov 0.0   ;;  %s826_s8 = sshll.u32 %s1386_s27, 7  ;;  %s400_s9 = scalar_lea.vmem [#allocation15], %s813_s16 }
  0xdb   : > { %916 = vmatprep.subr.bf16.mxu0 %v1405_v4  ;;  %v917_v5 = vpack.c.bf16 %v438_v2, %v437_v1  ;;  %v920_v7 = vpack.c.bf16 %v440_v6, %v439_v3  ;;  %v441_v8 = vld [vmem:[#allocation9 + $0x20] sm:$0xff]  ;;  %v442_v9 = vld [vmem:[#allocation9 + $0x28] sm:$0xff]  ;;  %v411_v12 = vand.u32 127, %v410_v11  ;;  %v443_v18 = vld [vmem:[#allocation9 + $0x30] sm:$0xff]  ;;  %913 = vmatprep.mubr.msk.f32.mxu0 %vm1406_vm1, %v1407_v26  ;;  %s660_s18 = sshll.u32 %s400_s9, 4  ;;  %s1737_s14 = scalar_lea.hbm %s1793_s7, %s826_s8  ;;  %s1739_s18 = int_to_ptr.vmem [resolvable:$true] %s660_s18 }
  0xdc   : > { %v923_v10 = vpack.c.bf16 %v442_v9, %v441_v8  ;;  %v444_v19 = vld [vmem:[#allocation9 + $0x38] sm:$0xff]  ;;  %v445_v21 = vld [vmem:[#allocation9 + $0x40] sm:$0xff]  ;;  %v446_v22 = vld [vmem:[#allocation9 + $0x48] sm:$0xff]  ;;  %s646_s17 = scalar_lea.sflag [#allocation5], %s1704_s1  ;;  %s1300_s23 = scalar_lea.vmem %s1739_s18, 128 }
  0xdd   : > { %918 = vmatpush3.bf16.msra.mxu0 %v917_v5  ;;  %vm412_vm0 = vcmp.lt.s32.totalorder %v411_v12, 32  ;;  %v926_v20 = vpack.c.bf16 %v444_v19, %v443_v18  ;;  %v929_v23 = vpack.c.bf16 %v446_v22, %v445_v21  ;;  %v447_v24 = vld [vmem:[#allocation9 + $0x50] sm:$0xff]  ;;  %v448_v25 = vld [vmem:[#allocation9 + $0x58] sm:$0xff]  ;;  %v449_v28 = vld [vmem:[#allocation9 + $0x60] sm:$0xff]  ;;  %p1301_p11 = scmp.ne.s32.totalorder %s1739_s18, %s1300_s23  ;;  %p1816_p0 = scmp.ne.s32.totalorder %s1811_s3, 0 }
  0xde   : > { %919 = vmatprep.subr.bf16.mxu0 %v1405_v4  ;;  %v932_v27 = vpack.c.bf16 %v448_v25, %v447_v24  ;;  %v450_v29 = vld [vmem:[#allocation9 + $0x68] sm:$0xff]  ;;  %v451_v31 = vld [vmem:[#allocation9 + $0x70] sm:$0xff]  ;;  %v452_v32 = vld [vmem:[#allocation9 + $0x78] sm:$0xff]  ;;  %s1408_s27 = smov [#allocation15]  }
  0xdf   : > { %v935_v30 = vpack.c.bf16 %v450_v29, %v449_v28  ;;  %v938_v33 = vpack.c.bf16 %v452_v32, %v451_v31  ;;  %v551_v34 = vld [vmem:[#allocation12 + $0x80] sm:$0xff]  ;;  %v552_v35 = vld [vmem:[#allocation12 + $0x88] sm:$0xff]  ;;  %v553_v39 = vld [vmem:[#allocation12 + $0x90] sm:$0xff]  ;;  %p1302_p5 = pnand %p1301_p11, %p1816_p0  ;;  %s1304_s21 = sshll.u32 %s1408_s27, 4  ;;  %s1305_s21 = int_to_ptr.vmem [resolvable:$false] %s1304_s21 }
  0xe0   : > { %v535_v36 = vld [vmem:[#allocation12] sm:$0xff]  ;;  %v940_v37 = vpack.c.bf16 %v552_v35, %v551_v34  ;;  %v536_v38 = vld [vmem:[#allocation12 + $0x8] sm:$0xff]  ;;  %v554_v40 = vld [vmem:[#allocation12 + $0x98] sm:$0xff]  ;;  %s1306_s12 = scalar_lea.vmem %s1305_s21, 256  ;;  %p1307_p10 = scmp.lt.s32.totalorder %s1739_s18, %s1305_s21 }
  0xe1   : > { %921 = vmatpush3.bf16.msra.mxu0 %v920_v7  ;;  %v942_v41 = vpack.c.bf16 %v536_v38, %v535_v36  ;;  %v944_v42 = vpack.c.bf16 %v554_v40, %v553_v39  ;;  %v537_v43 = vld [vmem:[#allocation12 + $0x10] sm:$0xff]  ;;  %v538_v44 = vld [vmem:[#allocation12 + $0x18] sm:$0xff]  ;;  %v555_v45 = vld [vmem:[#allocation12 + $0xa0] sm:$0xff]  ;;  %p1303_p7 = pneg %p1302_p5  ;;  %p1308_p13 = scmp.lt.s32.totalorder %s1306_s12, %s1300_s23 }
  0xe2   : > { %922 = vmatprep.subr.bf16.mxu0 %v1405_v4  ;;  %941 = vmatprep.subr.bf16.mxu1 %v940_v37  ;;  %v556_v46 = vld [vmem:[#allocation12 + $0xa8] sm:$0xff]  ;;  %v946_v47 = vpack.c.bf16 %v538_v44, %v537_v43  ;;  %v539_v49 = vld [vmem:[#allocation12 + $0x20] sm:$0xff]  ;;  %v557_v51 = vld [vmem:[#allocation12 + $0xb0] sm:$0xff] }
  0xe3   : > { %943 = vmatpush3.bf16.msra.mxu1 %v942_v41  ;;  %v948_v48 = vpack.c.bf16 %v556_v46, %v555_v45  ;;  %v540_v50 = vld [vmem:[#allocation12 + $0x28] sm:$0xff]  ;;  %v558_v52 = vld [vmem:[#allocation12 + $0xb8] sm:$0xff]  ;;  %v541_v55 = vld [vmem:[#allocation12 + $0x30] sm:$0xff]  ;;  %p1309_p2 = por %p1308_p13, %p1307_p10 }
  0xe4   : > { %945 = vmatprep.subr.bf16.mxu1 %v944_v42  ;;  %v950_v53 = vpack.c.bf16 %v540_v50, %v539_v49  ;;  %v952_v54 = vpack.c.bf16 %v558_v52, %v557_v51  ;;  %v542_v56 = vld [vmem:[#allocation12 + $0x38] sm:$0xff]  ;;  %v559_v57 = vld [vmem:[#allocation12 + $0xc0] sm:$0xff]  ;;  %v560_v58 = vld [vmem:[#allocation12 + $0xc8] sm:$0xff] }
  0xe5   : > { %924 = vmatpush3.bf16.msra.mxu0 %v923_v10  ;;  %v954_v59 = vpack.c.bf16 %v542_v56, %v541_v55  ;;  %v956_v60 = vpack.c.bf16 %v560_v58, %v559_v57  ;;  %v543_v61 = vld [vmem:[#allocation12 + $0x40] sm:$0xff]  ;;  %v544_v62 = vld [vmem:[#allocation12 + $0x48] sm:$0xff]  ;;  %v561_v63 = vld [vmem:[#allocation12 + $0xd0] sm:$0xff]  ;;  %p1310_p8 = pnand %p1309_p2, %p1303_p7 }
  0xe6   : > { %925 = vmatprep.subr.bf16.mxu0 %v1405_v4  ;;  %v958_v1 = vpack.c.bf16 %v544_v62, %v543_v61  ;;  %v545_v3 = vld [vmem:[#allocation12 + $0x50] sm:$0xff]  ;;  %v563_v5 = vld [vmem:[#allocation12 + $0xe0] sm:$0xff]  ;;  %v564_v6 = vld [vmem:[#allocation12 + $0xe8] sm:$0xff] }
  0xe7   : > { %947 = vmatpush3.bf16.msra.mxu1 %v946_v47  ;;  %v964_v8 = vpack.c.bf16 %v564_v6, %v563_v5  ;;  %v547_v9 = vld [vmem:[#allocation12 + $0x60] sm:$0xff]  ;;  %v548_v10 = vld [vmem:[#allocation12 + $0x68] sm:$0xff]  ;;  %v822_v19 = vld [vmem:[#allocation8] ss:$0 sm:$0xff] }
  0xe8   : > { %949 = vmatprep.subr.bf16.mxu1 %v948_v48  ;;  %v966_v11 = vpack.c.bf16 %v548_v10, %v547_v9  ;;  %v565_v22 = vld [vmem:[#allocation12 + $0xf0] sm:$0xff]  ;;  %v550_v26 = vld [vmem:[#allocation12 + $0x78] sm:$0xff] }
  0xe9   : > { %927 = vmatpush3.bf16.msra.mxu0 %v926_v20  ;;  %v549_v25 = vld [vmem:[#allocation12 + $0x70] sm:$0xff]  ;;  %v823_v28 = vld [vmem:[#allocation11] ss:$0 sm:$0xff] }
  0xea   : > { %928 = vmatprep.subr.bf16.mxu0 %v1405_v4 }
  0xeb   : > { %951 = vmatpush3.bf16.msra.mxu1 %v950_v53 }
  0xec   : > { %953 = vmatprep.subr.bf16.mxu1 %v952_v54 }
  0xed   : > { %930 = vmatpush3.bf16.msra.mxu0 %v929_v23  ;;  %v566_v23 = vld [vmem:[#allocation12 + $0xf8] sm:$0xff] }
  0xee   : > { %931 = vmatprep.subr.bf16.mxu0 %v1405_v4  ;;  %v968_v24 = vpack.c.bf16 %v566_v23, %v565_v22 }
  0xef   : > { %955 = vmatpush3.bf16.msra.mxu1 %v954_v59 }
  0xf0   : > { %957 = vmatprep.subr.bf16.mxu1 %v956_v60 }
  0xf1   : > { %933 = vmatpush3.bf16.msra.mxu0 %v932_v27  ;;  %v970_v27 = vpack.c.bf16 %v550_v26, %v549_v25 }
  0xf2   : > { %934 = vmatprep.subr.bf16.mxu0 %v1405_v4 }
  0xf3   : > { %959 = vmatpush3.bf16.msra.mxu1 %v958_v1 }
  0xf5   : > { %936 = vmatpush3.bf16.msra.mxu0 %v935_v30 }
  0xf6   : > { %937 = vmatprep.subr.bf16.mxu0 %v1405_v4  ;;  %v546_v4 = vld [vmem:[#allocation12 + $0x58] sm:$0xff] }
  0xf7   : > { %v962_v7 = vpack.c.bf16 %v546_v4, %v545_v3 }
  0xf9   : > { %939 = vmatpush3.bf16.msra.mxu0 %v938_v33  ;;  %v824_v33 = vld [vmem:[#allocation14] ss:$0 sm:$0xff] }
 0x167   : > { %v407_v13 = vpop.xlane.xlu0 %406 }
 0x168   : > { %v408_v14 = vmul.f32 0.03125, %v407_v13 }
 0x16a   : > { %v409_v15 = vsub.f32 %v405_v0, %v408_v14  ;;  %v562_v0 = vld [vmem:[#allocation12 + $0xd8] sm:$0xff] }
 0x16b   : > { %v960_v2 = vpack.c.bf16 %v562_v0, %v561_v63 }
 0x16c   : > { %v1726_v16 = vsel %vm412_vm0, %v409_v15, 0.0 }
 0x16d   : > { %v414_v17 = vmul.f32 %v1726_v16, %v1726_v16  ;;  %961 = vmatprep.subr.bf16.mxu1 %v960_v2 }
 0x16e   : > { %963 = vmatpush3.bf16.msra.mxu1 %v962_v7 }
 0x16f   : > { %415 = vadd.xlane.f32.xlu0 %v414_v17  ;;  %965 = vmatprep.subr.bf16.mxu1 %v964_v8  ;;  %v821_v17 = vld [vmem:[#allocation6] ss:$0 sm:$0xff] }
 0x172   : > { %967 = vmatpush3.bf16.msra.mxu1 %v966_v11 }
 0x173   : > { %969 = vmatprep.subr.bf16.mxu1 %v968_v24 }
 0x176   : > { %971 = vmatpush3.bf16.msra.mxu1 %v970_v27 }
 0x1fc   : > { %v416_v12 = vpop.xlane.xlu0 %415 }
 0x1fd   : > { %v417_v13 = vmul.f32 0.03125, %v416_v12 }
 0x1ff   : > { %v418_v14 = vadd.f32 1e-05, %v417_v13 }
 0x201   : > { %1100 = vrsqrt.f32 %v418_v14 }
 0x20b   : > { %v1101_v15 = vpop.eup %1100 }
 0x20c   : > { %v420_v18 = vmul.f32 %v1101_v15, %v1726_v16 }
 0x20e   : > { %v428_v20 = vmul.f32 %v821_v17, %v420_v18 }
 0x210   : > { %v436_v21 = vadd.f32 %v822_v19, %v428_v20 }
 0x212   : > { %914 = vmatmul.mubr.f32.vlgmr.msra.gmra.mrb[0].mxu0 %v436_v21 }
 0x2e5   : > { %v526_v29 = vpop.f32.mrb[0].mxu0 }
 0x2e6   : > { %v527_v30 = vadd.f32 %v823_v28, %v526_v29  ;;  %v915_v31 = vpop.f32.mrb[1].mxu0 }
 0x2e8   : > { %v530_v16 = vmax.f32 %v527_v30, 0.0 }
 0x2ea   : > { %639 = vmatmul.mubr.f32.vlgmr.msra.gmra.mrb[0].mxu1 %v530_v16 }
 0x3bd   : > { %v878_v32 = vpop.f32.mrb[0].mxu1 }
 0x3be   : > { %v879_v34 = vpop.f32.mrb[1].mxu1 }
 0x3bf   : > { %v880_v35 = vadd.f32 %v879_v34, %v878_v32 }
 0x3c1   : > { %v641_v36 = vadd.f32 %v880_v35, %v824_v33 }
 0x3c3   : > { %644 = vst [vmem:[%s400_s9] sm:$0xff] %v641_v36 }
 0x3c4   : > { %1313 = shalt.err (!%p1310_p8)
}
 0x3c5   : > { %s1314_s15 = scalar_lea.hbm %s1737_s14, 128  ;;  %s1318_s10 = scalar_lea.hbm %s1793_s7, 256 }
 0x3c6   : > { %p1315_p9 = scmp.ne.s32.totalorder %s1737_s14, %s1314_s15  ;;  %p1319_p3 = scmp.lt.u32.totalorder %s1737_s14, %s1793_s7 }
 0x3c7   : > { %p1320_p1 = scmp.lt.u32.totalorder %s1318_s10, %s1314_s15  ;;  %p1322_p11 = scmp.lt.u32.totalorder %s1314_s15, %s1737_s14 }
 0x3c8   : > { %p1316_p4 = pnand %p1315_p9, %p1816_p0 }
 0x3c9   : > { %p1321_p12 = por %p1320_p1, %p1319_p3 }
 0x3ca   : > { %p1317_p6 = pneg %p1316_p4 }
 0x3cb   : > { %p1323_p5 = por %p1322_p11, %p1321_p12 }
 0x3cd   : > { %p1324_p7 = pnand %p1323_p5, %p1317_p6 }
 0x3cf   : > { %1327 = shalt.err (!%p1324_p7)
}
 0x3d0   : > { %998 = dma.vmem_to_hbm [thread:$0]  (%p1816_p0), %s1739_s18, 128, %s1737_s14, %s646_s17  }
 0x3d1 PF: > { %s672_s9 = sand.u32 1, %s1374_s24   ;;  %p1817_p10 = scmp.ne.s32.totalorder %s1812_s30, 0 }
 0x3d2   : > { %p1818_p13 = scmp.ge.s32.totalorder %s1394_s29, 2  ;;  %s673_s19 = scalar_lea.sflag [#allocation5], %s672_s9 }
 0x3d4   : > { %p1024_p2 = pnand %p1818_p13, %p1817_p10 }
 0x3d6   : > { %1369 = dma.done.wait (!%p1024_p2), %s673_s19, 128  }
 0x3d7   : > { %1371 = vsyncadd (!%p1024_p2), %s673_s19, 4294967168  ;;  %s26_s29 = sadd.s32 1, %s1394_s29   ;;  %s1819_s24 = smov %s1378_s25 }
 0x3d8   : > { %p23_p8 = scmp.ge.s32.totalorder %s26_s29, 4   ;;  %s1820_s25 = smov %s1382_s26 }
 0x3d9   : > { %s1821_s26 = smov %s1654_s20  ;;  %s1822_s27 = smov %s1390_s28 }
 0x3da   : > { %s1823_s28 = smov %s1825_s13  ;;  %25 = sbr.rel (!%p23_p8) target bundleno = 12 (0xc), region = 123 }
 0x3e1   :  { %678 = vsyncpa [#allocation4], 1 }
 0x3e2   :  { %680 = vsyncpa [#allocation4 + $0x1], 1 }
 0x3e3   :  { %681 = vsyncpa [#allocation7], 1 }
 0x3e4   :  { %682 = vsyncpa [#allocation10], 1 }
 0x3e5   :  { %683 = vsyncpa [#allocation13], 1 }
 0x3e6   :  { %684 = vsyncpa [#allocation5], 1 }
 0x3e7   :  { %686 = vsyncpa [#allocation5 + $0x1], 1 }

// kernel: tpu_custom_call.1
= control target key start
LH: loop header
LB: loop body
LE: loop exit
PB: predicated region body
PF: predicated region fallthrough
CT: control target
= control target key end

     0   :  { %s1786_s0 = inlined_call_operand.hbm [shape: f32[16,128], index: 0, kind: input, shape index: {}]   ;;  %s1787_s1 = inlined_call_operand.hbm [shape: f32[1,128], index: 1, kind: input, shape index: {}]   ;;  %s1788_s2 = inlined_call_operand.hbm [shape: f32[1,128], index: 2, kind: input, shape index: {}]   ;;  %s1789_s3 = inlined_call_operand.hbm [shape: f32[128,128], index: 3, kind: input, shape index: {}]   ;;  %s1790_s4 = inlined_call_operand.hbm [shape: f32[1,128], index: 4, kind: input, shape index: {}]   ;;  %s1791_s5 = inlined_call_operand.hbm [shape: f32[256,128], index: 5, kind: input, shape index: {}]   ;;  %s1792_s6 = inlined_call_operand.hbm [shape: f32[1,128], index: 6, kind: input, shape index: {}]   ;;  %s1793_s7 = inlined_call_operand.hbm [shape: f32[16,128], index: 7, kind: output, shape index: {}]  }
   0x1   :  { %1799 = sst [smem:[#allocation21_spill]] %s1787_s1 }
   0x2   :  { %1800 = sst [smem:[#allocation22_spill]] %s1789_s3 }
   0x3   :  { %12 = vsyncpa [#allocation4], 0 }
   0x4   :  { %14 = vsyncpa [#allocation4 + $0x1], 0 }
   0x5   :  { %15 = vsyncpa [#allocation7], 0 }
   0x6   :  { %16 = vsyncpa [#allocation10], 0 }
   0x7   :  { %17 = vsyncpa [#allocation13], 0 }
   0x8   :  { %18 = vsyncpa [#allocation5], 0 }
   0x9   :  { %20 = vsyncpa [#allocation5 + $0x1], 0  ;;  %s1449_s24 = smov 0   ;;  %s1451_s25 = smov 0  }
   0xa   :  { %s1453_s26 = smov 0   ;;  %s1455_s27 = smov 0  }
   0xb   :  { %s1457_s28 = smov 0   ;;  %s1459_s29 = smov 0  }
   0xc LB: > { %s1797_s30 = sadd.s32 4294967295, %s1394_s29   ;;  %p802_p0 = scmp.ge.s32.totalorder %s1394_s29, 1  ;;  %s1394_s29 = sphi %s1459_s29, %s26_s29   ;;  %s1390_s28 = sphi %s1457_s28, %s1823_s28   ;;  %s1386_s27 = sphi %s1455_s27, %s1822_s27   ;;  %s1382_s26 = sphi %s1453_s26, %s1821_s26   ;;  %s1378_s25 = sphi %s1451_s25, %s1820_s25   ;;  %s1374_s24 = sphi %s1449_s24, %s1819_s24  }
   0xd   : > { %p1483_p1 = scmp.eq.s32.totalorder %s1797_s30, 0  ;;  %p233_p2 = scmp.lt.s32.totalorder %s1394_s29, 3 }
   0xe   : > { %s1396_s10 = smov [#allocation6]   ;;  %s1397_s12 = smov [#allocation9]  }
   0xf   : > { %s1801_s8 = scalar_select %p1483_p1, 1, 0 }
  0x10   : > { %p1488_p3 = pnand %p802_p0, %p233_p2  ;;  %s246_s11 = sshll.u32 %s1396_s10, 4  ;;  %s247_s11 = int_to_ptr.vmem [resolvable:$true] %s246_s11 }
  0x11   : > { %s267_s13 = sshll.u32 %s1397_s12, 4  ;;  %s1398_s15 = smov [#allocation12]   ;;  %s1501_s13 = int_to_ptr.vmem [resolvable:$true] %s267_s13 }
  0x12   : > { %s1802_s9 = scalar_select %p1488_p3, 1, 0 }
  0x13   : > { %p1000_p5 = pneg %p1488_p3  ;;  %s1503_s16 = sshll.u32 %s1398_s15, 4  ;;  %s294_s16 = int_to_ptr.vmem [resolvable:$true] %s1503_s16 }
  0x14   : > { %s1804_s1 = sld [smem:[#allocation21_spill]] }
  0x15   : > { %p1497_p6 = pnand %p1000_p5, %p1483_p1 }
  0x17   : > { %p1513_p8 = pneg %p1497_p6 }
  0x1a   : > { %s1102_s19 = scalar_lea.hbm %s1804_s1, 16 }
  0x1b   : > { %p1103_p7 = scmp.ne.s32.totalorder %s1804_s1, %s1102_s19  ;;  %p1109_p11 = scmp.lt.u32.totalorder %s1102_s19, %s1804_s1 }
  0x1d   : > { %p1105_p9 = pnand %p1513_p8, %p1103_p7 }
  0x1f   : > { %p1106_p10 = pneg %p1105_p9 }
  0x21   : > { %p1111_p12 = pnand %p1109_p11, %p1106_p10 }
  0x23   : > { %1114 = shalt.err (!%p1111_p12)
}
  0x24   : > { %s1115_s12 = scalar_lea.vmem %s247_s11, 16  ;;  %s1122_s15 = scalar_lea.vmem %s247_s11, 32 }
  0x25   : > { %p1116_p13 = scmp.ne.s32.totalorder %s247_s11, %s1115_s12  ;;  %p1123_p5 = scmp.lt.s32.totalorder %s247_s11, %s247_s11 }
  0x26   : > { %p1124_p4 = scmp.lt.s32.totalorder %s1122_s15, %s1115_s12 }
  0x27   : > { %p1118_p0 = pnand %p1116_p13, %p1513_p8 }
  0x28   : > { %p1125_p3 = por %p1124_p4, %p1123_p5 }
  0x29   : > { %p1119_p2 = pneg %p1118_p0 }
  0x2b   : > { %p1126_p1 = pnand %p1125_p3, %p1119_p2 }
  0x2d   : > { %1129 = shalt.err (!%p1126_p1)
}
  0x2e   : > { %1003 = dma.hbm_to_vmem [thread:$0]  (!%p1497_p6), %s1804_s1, 16, %s247_s11, [#allocation7]  }
  0x2f   : > { %s1806_s3 = sld [smem:[#allocation22_spill]] }
  0x35   : > { %s1130_s21 = scalar_lea.hbm %s1806_s3, 2048 }
  0x36   : > { %p1131_p7 = scmp.ne.s32.totalorder %s1806_s3, %s1130_s21  ;;  %p1137_p1 = scmp.lt.u32.totalorder %s1130_s21, %s1806_s3 }
  0x38   : > { %p1133_p9 = pnand %p1131_p7, %p1513_p8 }
  0x3a   : > { %p1134_p4 = pneg %p1133_p9 }
  0x3c   : > { %p1139_p3 = pnand %p1137_p1, %p1134_p4 }
  0x3e   : > { %1142 = shalt.err (!%p1139_p3)
}
  0x3f   : > { %s1143_s11 = scalar_lea.vmem %s1501_s13, 2048  ;;  %p1151_p13 = scmp.lt.s32.totalorder %s1501_s13, %s1501_s13 }
  0x40   : > { %p1144_p10 = scmp.ne.s32.totalorder %s1501_s13, %s1143_s11  ;;  %p1152_p0 = scmp.lt.s32.totalorder %s1143_s11, %s1143_s11 }
  0x42   : > { %p1146_p11 = pnand %p1144_p10, %p1513_p8  ;;  %p1153_p2 = por %p1152_p0, %p1151_p13 }
  0x44   : > { %p1147_p12 = pneg %p1146_p11 }
  0x46   : > { %p1154_p5 = pnand %p1153_p2, %p1147_p12 }
  0x48   : > { %1157 = shalt.err (!%p1154_p5)
}
  0x49   : > { %s1399_s17 = smov 128   ;;  %s1400_s18 = smov 8  }
  0x4a   : > { %1009 = dma.hbm_to_vmem [thread:$0]  (!%p1497_p6), %s1806_s3, 2048, %s1501_s13, [#allocation10], %s1399_s17, %s1399_s17, %s1400_s18  }
  0x4b   : > { %s1158_s10 = scalar_lea.hbm %s1791_s5, 4096 }
  0x4c   : > { %p1159_p7 = scmp.ne.s32.totalorder %s1791_s5, %s1158_s10  ;;  %p1165_p1 = scmp.lt.u32.totalorder %s1158_s10, %s1791_s5 }
  0x4e   : > { %p1161_p9 = pnand %p1159_p7, %p1513_p8 }
  0x50   : > { %p1162_p4 = pneg %p1161_p9 }
  0x52   : > { %p1167_p3 = pnand %p1165_p1, %p1162_p4 }
  0x54   : > { %1170 = shalt.err (!%p1167_p3)
}
  0x55   : > { %s1171_s19 = scalar_lea.vmem %s294_s16, 4096  ;;  %p1179_p13 = scmp.lt.s32.totalorder %s294_s16, %s294_s16 }
  0x56   : > { %p1172_p10 = scmp.ne.s32.totalorder %s294_s16, %s1171_s19  ;;  %p1180_p0 = scmp.lt.s32.totalorder %s1171_s19, %s1171_s19 }
  0x58   : > { %p1174_p11 = pnand %p1172_p10, %p1513_p8  ;;  %p1181_p2 = por %p1180_p0, %p1179_p13 }
  0x5a   : > { %p1175_p12 = pneg %p1174_p11 }
  0x5c   : > { %p1182_p5 = pnand %p1181_p2, %p1175_p12 }
  0x5e   : > { %1185 = shalt.err (!%p1182_p5)
}
  0x5f   : > { %1015 = dma.hbm_to_vmem [thread:$0]  (!%p1497_p6), %s1791_s5, 4096, %s294_s16, [#allocation13], %s1399_s17, %s1399_s17, %s1400_s18  }
  0x60   : > { %s1401_s30 = smov [#allocation8]   ;;  %s1402_s23 = smov [#allocation11]  }
  0x61   : > { %s257_s21 = sshll.u32 %s1401_s30, 4  ;;  %s281_s10 = sshll.u32 %s1402_s23, 4  ;;  %s258_s21 = int_to_ptr.vmem [resolvable:$true] %s257_s21  ;;  %s282_s10 = int_to_ptr.vmem [resolvable:$true] %s281_s10 }
  0x62   : > { %s1186_s11 = scalar_lea.hbm %s1788_s2, 16 }
  0x63   : > { %p1187_p7 = scmp.ne.s32.totalorder %s1788_s2, %s1186_s11  ;;  %p1193_p1 = scmp.lt.u32.totalorder %s1186_s11, %s1788_s2 }
  0x65   : > { %p1189_p9 = pnand %p1187_p7, %p1513_p8 }
  0x67   : > { %p1190_p4 = pneg %p1189_p9 }
  0x69   : > { %p1195_p3 = pnand %p1193_p1, %p1190_p4 }
  0x6b   : > { %1198 = shalt.err (!%p1195_p3)
}
  0x6c   : > { %s1199_s16 = scalar_lea.vmem %s258_s21, 16  ;;  %s1206_s17 = scalar_lea.vmem %s258_s21, 32 }
  0x6d   : > { %p1200_p10 = scmp.ne.s32.totalorder %s258_s21, %s1199_s16  ;;  %p1207_p13 = scmp.lt.s32.totalorder %s258_s21, %s258_s21 }
  0x6e   : > { %p1208_p0 = scmp.lt.s32.totalorder %s1206_s17, %s1199_s16 }
  0x6f   : > { %p1202_p11 = pnand %p1200_p10, %p1513_p8 }
  0x70   : > { %p1209_p2 = por %p1208_p0, %p1207_p13 }
  0x71   : > { %p1203_p12 = pneg %p1202_p11 }
  0x73   : > { %p1210_p5 = pnand %p1209_p2, %p1203_p12 }
  0x75   : > { %1213 = shalt.err (!%p1210_p5)
}
  0x76   : > { %1006 = dma.hbm_to_vmem [thread:$0]  (!%p1497_p6), %s1788_s2, 16, %s258_s21, [#allocation7]  }
  0x77   : > { %s1214_s30 = scalar_lea.hbm %s1790_s4, 16 }
  0x78   : > { %p1215_p7 = scmp.ne.s32.totalorder %s1790_s4, %s1214_s30  ;;  %p1221_p1 = scmp.lt.u32.totalorder %s1214_s30, %s1790_s4 }
  0x7a   : > { %p1217_p9 = pnand %p1215_p7, %p1513_p8 }
  0x7c   : > { %p1218_p4 = pneg %p1217_p9 }
  0x7e   : > { %p1223_p3 = pnand %p1221_p1, %p1218_p4 }
  0x80   : > { %1226 = shalt.err (!%p1223_p3)
}
  0x81   : > { %s1227_s19 = scalar_lea.vmem %s282_s10, 16  ;;  %s1234_s21 = scalar_lea.vmem %s282_s10, 32 }
  0x82   : > { %p1228_p10 = scmp.ne.s32.totalorder %s282_s10, %s1227_s19  ;;  %p1235_p13 = scmp.lt.s32.totalorder %s282_s10, %s282_s10 }
  0x83   : > { %p1236_p0 = scmp.lt.s32.totalorder %s1234_s21, %s1227_s19 }
  0x84   : > { %p1230_p11 = pnand %p1228_p10, %p1513_p8 }
  0x85   : > { %p1237_p2 = por %p1236_p0, %p1235_p13 }
  0x86   : > { %p1231_p12 = pneg %p1230_p11 }
  0x88   : > { %p1238_p5 = pnand %p1237_p2, %p1231_p12 }
  0x8a   : > { %1241 = shalt.err (!%p1238_p5)
}
  0x8b   : > { %1012 = dma.hbm_to_vmem [thread:$0]  (!%p1497_p6), %s1790_s4, 16, %s282_s10, [#allocation10]  }
  0x8c   : > { %s1403_s17 = smov [#allocation14]   ;;  %s1242_s20 = scalar_lea.hbm %s1792_s6, 16 }
  0x8d   : > { %s309_s1 = sshll.u32 %s1403_s17, 4  ;;  %p1243_p7 = scmp.ne.s32.totalorder %s1792_s6, %s1242_s20  ;;  %s310_s1 = int_to_ptr.vmem [resolvable:$true] %s309_s1 }
  0x8e   : > { %p1249_p1 = scmp.lt.u32.totalorder %s1242_s20, %s1792_s6 }
  0x8f   : > { %p1245_p9 = pnand %p1243_p7, %p1513_p8 }
  0x91   : > { %p1246_p4 = pneg %p1245_p9 }
  0x93   : > { %p1251_p3 = pnand %p1249_p1, %p1246_p4 }
  0x95   : > { %1254 = shalt.err (!%p1251_p3)
}
  0x96   : > { %s1255_s10 = scalar_lea.vmem %s310_s1, 16  ;;  %s1262_s11 = scalar_lea.vmem %s310_s1, 32 }
  0x97   : > { %p1256_p10 = scmp.ne.s32.totalorder %s310_s1, %s1255_s10  ;;  %p1263_p13 = scmp.lt.s32.totalorder %s310_s1, %s310_s1 }
  0x98   : > { %p1264_p0 = scmp.lt.s32.totalorder %s1262_s11, %s1255_s10 }
  0x99   : > { %p1258_p11 = pnand %p1256_p10, %p1513_p8 }
  0x9a   : > { %p1265_p2 = por %p1264_p0, %p1263_p13 }
  0x9b   : > { %p1259_p12 = pneg %p1258_p11 }
  0x9d   : > { %p1266_p5 = pnand %p1265_p2, %p1259_p12 }
  0x9f   : > { %1269 = shalt.err (!%p1266_p5)
}
  0xa0   : > { %1018 = dma.hbm_to_vmem [thread:$0]  (!%p1497_p6), %s1792_s6, 16, %s310_s1, [#allocation13]  }
  0xa1   : > { %s801_s22 = sadd.s32 4294967294, %s1394_s29   ;;  %s38_s13 = sadd.s32 1, %s1390_s28 }
  0xa2   : > { %p40_p8 = scmp.ge.s32.totalorder %s38_s13, 2  ;;  %s45_s14 = sadd.s32 1, %s1382_s26 }
  0xa3   : > { %p52_p7 = scmp.ne.s32.totalorder %s1382_s26, %s1378_s25  ;;  %p53_p9 = scmp.eq.s32.totalorder %s1394_s29, 0 }
  0xa4   : > { %s1825_s13 = smov (%p40_p8, %s38_s13), 0  ;;  %p58_p1 = scmp.ne.s32.totalorder %s1378_s25, %s1374_s24 }
  0xa5   : > { %p1633_p4 = por %p53_p9, %p52_p7  ;;  %s42_s17 = ssub.s32 %s1390_s28, %s1825_s13 }
  0xa6   : > { %s1808_s1 = sadd.s32 4294967295, %s1394_s29   ;;  %p43_p3 = scmp.eq.s32.totalorder %s42_s17, 0 }
  0xa7   : > { %p220_p6 = scmp.eq.s32.totalorder %s1808_s1, 1  ;;  %p1809_p10 = scmp.ne.s32.totalorder %s1801_s8, 0 }
  0xa8   : > { %p226_p13 = scmp.eq.s32.totalorder %s801_s22, 1  ;;  %p1033_p2 = scmp.lt.s32.totalorder %s1394_s29, 2 }
  0xa9   : > { %p1645_p11 = por %p1809_p10, %p58_p1  ;;  %p1649_p12 = por %p220_p6, %p52_p7 }
  0xaa   : > { %s1654_s20 = scalar_select %p43_p3, %s1382_s26, %s45_s14  }
  0xab   : > { %s1811_s3 = scalar_select %p1649_p12, 1, 0 }
  0xac   : > { %p1656_p0 = por %p226_p13, %p58_p1  ;;  %s320_s23 = sand.u32 1, %s1382_s26  }
  0xad   : > { %s811_s12 = sshll.u32 %s1390_s28, 7  ;;  %s810_s15 = sshll.u32 %s320_s23, 3 }
  0xae   : > { %s1812_s30 = scalar_select %p1656_p0, 1, 0 }
  0xaf   : > { %s1666_s19 = scalar_lea.hbm %s1786_s0, %s811_s12  ;;  %s324_s21 = scalar_lea.vmem [#allocation3], %s810_s15 }
  0xb0   : > { %s331_s22 = sshll.u32 %s324_s21, 4  ;;  %p1670_p5 = pnand %p1033_p2, %p1633_p4  ;;  %s1674_s22 = int_to_ptr.vmem [resolvable:$true] %s331_s22 }
  0xb1   : > { %s321_s17 = scalar_lea.sflag [#allocation4], %s320_s23  ;;  %s1270_s1 = scalar_lea.hbm %s1666_s19, 128 }
  0xb2   : > { %p1271_p8 = scmp.ne.s32.totalorder %s1666_s19, %s1270_s1  ;;  %p1272_p7 = pneg %p1670_p5 }
  0xb3   : > { %s1275_s16 = scalar_lea.hbm %s1786_s0, 256  ;;  %p1276_p4 = scmp.lt.u32.totalorder %s1666_s19, %s1786_s0 }
  0xb4   : > { %p1273_p9 = pnand %p1272_p7, %p1271_p8  ;;  %p1277_p6 = scmp.lt.u32.totalorder %s1275_s16, %s1270_s1 }
  0xb5   : > { %p1279_p10 = scmp.lt.u32.totalorder %s1270_s1, %s1666_s19 }
  0xb6   : > { %p1274_p1 = pneg %p1273_p9  ;;  %p1278_p3 = por %p1277_p6, %p1276_p4 }
  0xb8   : > { %p1280_p13 = por %p1279_p10, %p1278_p3 }
  0xba   : > { %p1281_p2 = pnand %p1280_p13, %p1274_p1 }
  0xbc   : > { %1284 = shalt.err (!%p1281_p2)
}
  0xbd   : > { %s1285_s23 = scalar_lea.vmem %s1674_s22, 128  ;;  %s1404_s21 = smov [#allocation3]  }
  0xbe   : > { %p1286_p8 = scmp.ne.s32.totalorder %s1674_s22, %s1285_s23  ;;  %s1290_s12 = sshll.u32 %s1404_s21, 4  ;;  %s1291_s12 = int_to_ptr.vmem [resolvable:$false] %s1290_s12 }
  0xbf   : > { %s1292_s15 = scalar_lea.vmem %s1291_s12, 256  ;;  %p1293_p12 = scmp.lt.s32.totalorder %s1674_s22, %s1291_s12 }
  0xc0   : > { %p1288_p9 = pnand %p1286_p8, %p1272_p7  ;;  %p1294_p4 = scmp.lt.s32.totalorder %s1292_s15, %s1285_s23 }
  0xc2   : > { %p1289_p0 = pneg %p1288_p9  ;;  %p1295_p6 = por %p1294_p4, %p1293_p12 }
  0xc4   : > { %p1296_p3 = pnand %p1295_p6, %p1289_p0 }
  0xc6   : > { %1299 = shalt.err (!%p1296_p3)
}
  0xc7   : > { %1022 = dma.hbm_to_vmem [thread:$0]  (!%p1670_p5), %s1666_s19, 128, %s1674_s22, %s321_s17  }
  0xc8   : > { %p1814_p1 = scmp.ne.s32.totalorder %s1802_s9, 0 }
  0xc9   : > { %s1704_s1 = sand.u32 (!%p1814_p1), 1, %s1378_s25  }
  0xca   : > { %340 = sbr.rel (%p1814_p1) target bundleno = 977 (0x3d1), region = 48  ;;  %s813_s16 = sshll.u32 (!%p1814_p1), %s1704_s1, 3 }
  0xcb   : > { %s343_s10 = scalar_lea.sflag (!%p1814_p1), [#allocation4], %s1704_s1  ;;  %s346_s11 = scalar_lea.vmem (!%p1814_p1), [#allocation3], %s813_s16 }
  0xd1   : > { %1353 = dma.done.wait (%p1645_p11), %s343_s10, 128  }
  0xd2   : > { %1355 = vsyncadd (%p1645_p11), %s343_s10, 4294967168  ;;  %p1815_p12 = scmp.ne.s32.totalorder %s1801_s8, 0 }
  0xd4   : > { %1357 = dma.done.wait (%p1815_p12), [#allocation7], 32  }
  0xd5   : > { %1359 = vsyncadd (%p1815_p12), [#allocation7], 4294967264 }
  0xd6   : > { %1361 = dma.done.wait (%p1815_p12), [#allocation10], 2064  }
  0xd7   : > { %1363 = vsyncadd (%p1815_p12), [#allocation10], 4294965232 }
  0xd8   : > { %1365 = dma.done.wait (%p1815_p12), [#allocation13], 4112  }
  0xd9   : > { %1367 = vsyncadd (%p1815_p12), [#allocation13], 4294963184  ;;  %v405_v0 = vld [vmem:[%s346_s11] sm:$0xff]  ;;  %v437_v1 = vld [vmem:[#allocation9] sm:$0xff]  ;;  %v1405_v4 = vmov 0.0|0.0   ;;  %v410_v11 = vlaneseq  ;;  %vm1406_vm1 = vmmov 0  }
  0xda   : > { %406 = vadd.xlane.f32.xlu0 %v405_v0  ;;  %638 = vmatprep.mubr.f32.mxu1 %v405_v0  ;;  %v438_v2 = vld [vmem:[#allocation9 + $0x8] sm:$0xff]  ;;  %v439_v3 = vld [vmem:[#allocation9 + $0x10] sm:$0xff]  ;;  %v440_v6 = vld [vmem:[#allocation9 + $0x18] sm:$0xff]  ;;  %v1407_v26 = vmov 0.0   ;;  %s826_s8 = sshll.u32 %s1386_s27, 7  ;;  %s400_s9 = scalar_lea.vmem [#allocation15], %s813_s16 }
  0xdb   : > { %916 = vmatprep.subr.bf16.mxu0 %v1405_v4  ;;  %v917_v5 = vpack.c.bf16 %v438_v2, %v437_v1  ;;  %v920_v7 = vpack.c.bf16 %v440_v6, %v439_v3  ;;  %v441_v8 = vld [vmem:[#allocation9 + $0x20] sm:$0xff]  ;;  %v442_v9 = vld [vmem:[#allocation9 + $0x28] sm:$0xff]  ;;  %v411_v12 = vand.u32 127, %v410_v11  ;;  %v443_v18 = vld [vmem:[#allocation9 + $0x30] sm:$0xff]  ;;  %913 = vmatprep.mubr.msk.f32.mxu0 %vm1406_vm1, %v1407_v26  ;;  %s660_s18 = sshll.u32 %s400_s9, 4  ;;  %s1737_s14 = scalar_lea.hbm %s1793_s7, %s826_s8  ;;  %s1739_s18 = int_to_ptr.vmem [resolvable:$true] %s660_s18 }
  0xdc   : > { %v923_v10 = vpack.c.bf16 %v442_v9, %v441_v8  ;;  %v444_v19 = vld [vmem:[#allocation9 + $0x38] sm:$0xff]  ;;  %v445_v21 = vld [vmem:[#allocation9 + $0x40] sm:$0xff]  ;;  %v446_v22 = vld [vmem:[#allocation9 + $0x48] sm:$0xff]  ;;  %s646_s17 = scalar_lea.sflag [#allocation5], %s1704_s1  ;;  %s1300_s23 = scalar_lea.vmem %s1739_s18, 128 }
  0xdd   : > { %918 = vmatpush3.bf16.msra.mxu0 %v917_v5  ;;  %vm412_vm0 = vcmp.lt.s32.totalorder %v411_v12, 32  ;;  %v926_v20 = vpack.c.bf16 %v444_v19, %v443_v18  ;;  %v929_v23 = vpack.c.bf16 %v446_v22, %v445_v21  ;;  %v447_v24 = vld [vmem:[#allocation9 + $0x50] sm:$0xff]  ;;  %v448_v25 = vld [vmem:[#allocation9 + $0x58] sm:$0xff]  ;;  %v449_v28 = vld [vmem:[#allocation9 + $0x60] sm:$0xff]  ;;  %p1301_p11 = scmp.ne.s32.totalorder %s1739_s18, %s1300_s23  ;;  %p1816_p0 = scmp.ne.s32.totalorder %s1811_s3, 0 }
  0xde   : > { %919 = vmatprep.subr.bf16.mxu0 %v1405_v4  ;;  %v932_v27 = vpack.c.bf16 %v448_v25, %v447_v24  ;;  %v450_v29 = vld [vmem:[#allocation9 + $0x68] sm:$0xff]  ;;  %v451_v31 = vld [vmem:[#allocation9 + $0x70] sm:$0xff]  ;;  %v452_v32 = vld [vmem:[#allocation9 + $0x78] sm:$0xff]  ;;  %s1408_s27 = smov [#allocation15]  }
  0xdf   : > { %v935_v30 = vpack.c.bf16 %v450_v29, %v449_v28  ;;  %v938_v33 = vpack.c.bf16 %v452_v32, %v451_v31  ;;  %v551_v34 = vld [vmem:[#allocation12 + $0x80] sm:$0xff]  ;;  %v552_v35 = vld [vmem:[#allocation12 + $0x88] sm:$0xff]  ;;  %v553_v39 = vld [vmem:[#allocation12 + $0x90] sm:$0xff]  ;;  %p1302_p5 = pnand %p1301_p11, %p1816_p0  ;;  %s1304_s21 = sshll.u32 %s1408_s27, 4  ;;  %s1305_s21 = int_to_ptr.vmem [resolvable:$false] %s1304_s21 }
  0xe0   : > { %v535_v36 = vld [vmem:[#allocation12] sm:$0xff]  ;;  %v940_v37 = vpack.c.bf16 %v552_v35, %v551_v34  ;;  %v536_v38 = vld [vmem:[#allocation12 + $0x8] sm:$0xff]  ;;  %v554_v40 = vld [vmem:[#allocation12 + $0x98] sm:$0xff]  ;;  %s1306_s12 = scalar_lea.vmem %s1305_s21, 256  ;;  %p1307_p10 = scmp.lt.s32.totalorder %s1739_s18, %s1305_s21 }
  0xe1   : > { %921 = vmatpush3.bf16.msra.mxu0 %v920_v7  ;;  %v942_v41 = vpack.c.bf16 %v536_v38, %v535_v36  ;;  %v944_v42 = vpack.c.bf16 %v554_v40, %v553_v39  ;;  %v537_v43 = vld [vmem:[#allocation12 + $0x10] sm:$0xff]  ;;  %v538_v44 = vld [vmem:[#allocation12 + $0x18] sm:$0xff]  ;;  %v555_v45 = vld [vmem:[#allocation12 + $0xa0] sm:$0xff]  ;;  %p1303_p7 = pneg %p1302_p5  ;;  %p1308_p13 = scmp.lt.s32.totalorder %s1306_s12, %s1300_s23 }
  0xe2   : > { %922 = vmatprep.subr.bf16.mxu0 %v1405_v4  ;;  %941 = vmatprep.subr.bf16.mxu1 %v940_v37  ;;  %v556_v46 = vld [vmem:[#allocation12 + $0xa8] sm:$0xff]  ;;  %v946_v47 = vpack.c.bf16 %v538_v44, %v537_v43  ;;  %v539_v49 = vld [vmem:[#allocation12 + $0x20] sm:$0xff]  ;;  %v557_v51 = vld [vmem:[#allocation12 + $0xb0] sm:$0xff] }
  0xe3   : > { %943 = vmatpush3.bf16.msra.mxu1 %v942_v41  ;;  %v948_v48 = vpack.c.bf16 %v556_v46, %v555_v45  ;;  %v540_v50 = vld [vmem:[#allocation12 + $0x28] sm:$0xff]  ;;  %v558_v52 = vld [vmem:[#allocation12 + $0xb8] sm:$0xff]  ;;  %v541_v55 = vld [vmem:[#allocation12 + $0x30] sm:$0xff]  ;;  %p1309_p2 = por %p1308_p13, %p1307_p10 }
  0xe4   : > { %945 = vmatprep.subr.bf16.mxu1 %v944_v42  ;;  %v950_v53 = vpack.c.bf16 %v540_v50, %v539_v49  ;;  %v952_v54 = vpack.c.bf16 %v558_v52, %v557_v51  ;;  %v542_v56 = vld [vmem:[#allocation12 + $0x38] sm:$0xff]  ;;  %v559_v57 = vld [vmem:[#allocation12 + $0xc0] sm:$0xff]  ;;  %v560_v58 = vld [vmem:[#allocation12 + $0xc8] sm:$0xff] }
  0xe5   : > { %924 = vmatpush3.bf16.msra.mxu0 %v923_v10  ;;  %v954_v59 = vpack.c.bf16 %v542_v56, %v541_v55  ;;  %v956_v60 = vpack.c.bf16 %v560_v58, %v559_v57  ;;  %v543_v61 = vld [vmem:[#allocation12 + $0x40] sm:$0xff]  ;;  %v544_v62 = vld [vmem:[#allocation12 + $0x48] sm:$0xff]  ;;  %v561_v63 = vld [vmem:[#allocation12 + $0xd0] sm:$0xff]  ;;  %p1310_p8 = pnand %p1309_p2, %p1303_p7 }
  0xe6   : > { %925 = vmatprep.subr.bf16.mxu0 %v1405_v4  ;;  %v958_v1 = vpack.c.bf16 %v544_v62, %v543_v61  ;;  %v545_v3 = vld [vmem:[#allocation12 + $0x50] sm:$0xff]  ;;  %v563_v5 = vld [vmem:[#allocation12 + $0xe0] sm:$0xff]  ;;  %v564_v6 = vld [vmem:[#allocation12 + $0xe8] sm:$0xff] }
  0xe7   : > { %947 = vmatpush3.bf16.msra.mxu1 %v946_v47  ;;  %v964_v8 = vpack.c.bf16 %v564_v6, %v563_v5  ;;  %v547_v9 = vld [vmem:[#allocation12 + $0x60] sm:$0xff]  ;;  %v548_v10 = vld [vmem:[#allocation12 + $0x68] sm:$0xff]  ;;  %v822_v19 = vld [vmem:[#allocation8] ss:$0 sm:$0xff] }
  0xe8   : > { %949 = vmatprep.subr.bf16.mxu1 %v948_v48  ;;  %v966_v11 = vpack.c.bf16 %v548_v10, %v547_v9  ;;  %v565_v22 = vld [vmem:[#allocation12 + $0xf0] sm:$0xff]  ;;  %v550_v26 = vld [vmem:[#allocation12 + $0x78] sm:$0xff] }
  0xe9   : > { %927 = vmatpush3.bf16.msra.mxu0 %v926_v20  ;;  %v549_v25 = vld [vmem:[#allocation12 + $0x70] sm:$0xff]  ;;  %v823_v28 = vld [vmem:[#allocation11] ss:$0 sm:$0xff] }
  0xea   : > { %928 = vmatprep.subr.bf16.mxu0 %v1405_v4 }
  0xeb   : > { %951 = vmatpush3.bf16.msra.mxu1 %v950_v53 }
  0xec   : > { %953 = vmatprep.subr.bf16.mxu1 %v952_v54 }
  0xed   : > { %930 = vmatpush3.bf16.msra.mxu0 %v929_v23  ;;  %v566_v23 = vld [vmem:[#allocation12 + $0xf8] sm:$0xff] }
  0xee   : > { %931 = vmatprep.subr.bf16.mxu0 %v1405_v4  ;;  %v968_v24 = vpack.c.bf16 %v566_v23, %v565_v22 }
  0xef   : > { %955 = vmatpush3.bf16.msra.mxu1 %v954_v59 }
  0xf0   : > { %957 = vmatprep.subr.bf16.mxu1 %v956_v60 }
  0xf1   : > { %933 = vmatpush3.bf16.msra.mxu0 %v932_v27  ;;  %v970_v27 = vpack.c.bf16 %v550_v26, %v549_v25 }
  0xf2   : > { %934 = vmatprep.subr.bf16.mxu0 %v1405_v4 }
  0xf3   : > { %959 = vmatpush3.bf16.msra.mxu1 %v958_v1 }
  0xf5   : > { %936 = vmatpush3.bf16.msra.mxu0 %v935_v30 }
  0xf6   : > { %937 = vmatprep.subr.bf16.mxu0 %v1405_v4  ;;  %v546_v4 = vld [vmem:[#allocation12 + $0x58] sm:$0xff] }
  0xf7   : > { %v962_v7 = vpack.c.bf16 %v546_v4, %v545_v3 }
  0xf9   : > { %939 = vmatpush3.bf16.msra.mxu0 %v938_v33  ;;  %v824_v33 = vld [vmem:[#allocation14] ss:$0 sm:$0xff] }
 0x167   : > { %v407_v13 = vpop.xlane.xlu0 %406 }
 0x168   : > { %v408_v14 = vmul.f32 0.03125, %v407_v13 }
 0x16a   : > { %v409_v15 = vsub.f32 %v405_v0, %v408_v14  ;;  %v562_v0 = vld [vmem:[#allocation12 + $0xd8] sm:$0xff] }
 0x16b   : > { %v960_v2 = vpack.c.bf16 %v562_v0, %v561_v63 }
 0x16c   : > { %v1726_v16 = vsel %vm412_vm0, %v409_v15, 0.0 }
 0x16d   : > { %v414_v17 = vmul.f32 %v1726_v16, %v1726_v16  ;;  %961 = vmatprep.subr.bf16.mxu1 %v960_v2 }
 0x16e   : > { %963 = vmatpush3.bf16.msra.mxu1 %v962_v7 }
 0x16f   : > { %415 = vadd.xlane.f32.xlu0 %v414_v17  ;;  %965 = vmatprep.subr.bf16.mxu1 %v964_v8  ;;  %v821_v17 = vld [vmem:[#allocation6] ss:$0 sm:$0xff] }
 0x172   : > { %967 = vmatpush3.bf16.msra.mxu1 %v966_v11 }
 0x173   : > { %969 = vmatprep.subr.bf16.mxu1 %v968_v24 }
 0x176   : > { %971 = vmatpush3.bf16.msra.mxu1 %v970_v27 }
 0x1fc   : > { %v416_v12 = vpop.xlane.xlu0 %415 }
 0x1fd   : > { %v417_v13 = vmul.f32 0.03125, %v416_v12 }
 0x1ff   : > { %v418_v14 = vadd.f32 1e-05, %v417_v13 }
 0x201   : > { %1100 = vrsqrt.f32 %v418_v14 }
 0x20b   : > { %v1101_v15 = vpop.eup %1100 }
 0x20c   : > { %v420_v18 = vmul.f32 %v1101_v15, %v1726_v16 }
 0x20e   : > { %v428_v20 = vmul.f32 %v821_v17, %v420_v18 }
 0x210   : > { %v436_v21 = vadd.f32 %v822_v19, %v428_v20 }
 0x212   : > { %914 = vmatmul.mubr.f32.vlgmr.msra.gmra.mrb[0].mxu0 %v436_v21 }
 0x2e5   : > { %v526_v29 = vpop.f32.mrb[0].mxu0 }
 0x2e6   : > { %v527_v30 = vadd.f32 %v823_v28, %v526_v29  ;;  %v915_v31 = vpop.f32.mrb[1].mxu0 }
 0x2e8   : > { %v530_v16 = vmax.f32 %v527_v30, 0.0 }
 0x2ea   : > { %639 = vmatmul.mubr.f32.vlgmr.msra.gmra.mrb[0].mxu1 %v530_v16 }
 0x3bd   : > { %v878_v32 = vpop.f32.mrb[0].mxu1 }
 0x3be   : > { %v879_v34 = vpop.f32.mrb[1].mxu1 }
 0x3bf   : > { %v880_v35 = vadd.f32 %v879_v34, %v878_v32 }
 0x3c1   : > { %v641_v36 = vadd.f32 %v880_v35, %v824_v33 }
 0x3c3   : > { %644 = vst [vmem:[%s400_s9] sm:$0xff] %v641_v36 }
 0x3c4   : > { %1313 = shalt.err (!%p1310_p8)
}
 0x3c5   : > { %s1314_s15 = scalar_lea.hbm %s1737_s14, 128  ;;  %s1318_s10 = scalar_lea.hbm %s1793_s7, 256 }
 0x3c6   : > { %p1315_p9 = scmp.ne.s32.totalorder %s1737_s14, %s1314_s15  ;;  %p1319_p3 = scmp.lt.u32.totalorder %s1737_s14, %s1793_s7 }
 0x3c7   : > { %p1320_p1 = scmp.lt.u32.totalorder %s1318_s10, %s1314_s15  ;;  %p1322_p11 = scmp.lt.u32.totalorder %s1314_s15, %s1737_s14 }
 0x3c8   : > { %p1316_p4 = pnand %p1315_p9, %p1816_p0 }
 0x3c9   : > { %p1321_p12 = por %p1320_p1, %p1319_p3 }
 0x3ca   : > { %p1317_p6 = pneg %p1316_p4 }
 0x3cb   : > { %p1323_p5 = por %p1322_p11, %p1321_p12 }
 0x3cd   : > { %p1324_p7 = pnand %p1323_p5, %p1317_p6 }
 0x3cf   : > { %1327 = shalt.err (!%p1324_p7)
}
 0x3d0   : > { %998 = dma.vmem_to_hbm [thread:$0]  (%p1816_p0), %s1739_s18, 128, %s1737_s14, %s646_s17  }
 0x3d1 PF: > { %s672_s9 = sand.u32 1, %s1374_s24   ;;  %p1817_p10 = scmp.ne.s32.totalorder %s1812_s30, 0 }
 0x3d2   : > { %p1818_p13 = scmp.ge.s32.totalorder %s1394_s29, 2  ;;  %s673_s19 = scalar_lea.sflag [#allocation5], %s672_s9 }
 0x3d4   : > { %p1024_p2 = pnand %p1818_p13, %p1817_p10 }
 0x3d6   : > { %1369 = dma.done.wait (!%p1024_p2), %s673_s19, 128  }
 0x3d7   : > { %1371 = vsyncadd (!%p1024_p2), %s673_s19, 4294967168  ;;  %s26_s29 = sadd.s32 1, %s1394_s29   ;;  %s1819_s24 = smov %s1378_s25 }
 0x3d8   : > { %p23_p8 = scmp.ge.s32.totalorder %s26_s29, 4   ;;  %s1820_s25 = smov %s1382_s26 }
 0x3d9   : > { %s1821_s26 = smov %s1654_s20  ;;  %s1822_s27 = smov %s1390_s28 }
 0x3da   : > { %s1823_s28 = smov %s1825_s13  ;;  %25 = sbr.rel (!%p23_p8) target bundleno = 12 (0xc), region = 123 }
 0x3e1   :  { %678 = vsyncpa [#allocation4], 1 }
 0x3e2   :  { %680 = vsyncpa [#allocation4 + $0x1], 1 }
 0x3e3   :  { %681 = vsyncpa [#allocation7], 1 }
 0x3e4   :  { %682 = vsyncpa [#allocation10], 1 }
 0x3e5   :  { %683 = vsyncpa [#allocation13], 1 }
 0x3e6   :  { %684 = vsyncpa [#allocation5], 1 }
 0x3e7   :  { %686 = vsyncpa [#allocation5 + $0x1], 1 }

</bundles_post_ra>
